<compile_context>
chip_gen: v7x
topology: tpu7x:2x2x1
jax: 0.10.0
libtpu: 0.0.40
codegen_flags: <defaults>
</compile_context>

<pallas_src>
import functools

import jax
import jax.numpy as jnp
from jax.experimental import pallas as pl
from jax.experimental.pallas import tpu as pltpu

ZP = 128  # lane-padded z width used for the fused mu/log_var projection


def _round_up(n, m):
    return ((n + m - 1) // m) * m


def _pick_batch_tile(batch, device_kind=""):
    """Per-chip batch tile (always a multiple of 8 sublanes)."""
    kind = device_kind.lower()
    b8 = _round_up(max(batch, 8), 8)
    if "v7" in kind:
        # 2 TensorCores/chip: keep >= 2 "parallel" grid steps when possible.
        return 128 if b8 > 128 else b8
    if "v6" in kind:
        # Single TC, 128 MiB VMEM: bigger tiles amortize per-grid-step overhead.
        return min(b8, 512)
    # v5e / default: 128-256 rows already fill the 4x128x128 MXU.
    return min(b8, 256)


def vae_forward_kernel(x_ref, eps_ref, w1_ref, b1_ref, w23_ref, b23_ref,
                       w4_ref, b4_ref, w5_ref, b5_ref, xrec_ref, stats_ref):
    bf16 = jnp.bfloat16

    # encode: h = relu(x @ W1 + b1)   (bf16 MXU inputs, f32 accumulation)
    x = x_ref[...].astype(bf16)        # f32 -> bf16 cast happens in VMEM, not in HBM
    h = jnp.dot(x, w1_ref[...], preferred_element_type=jnp.float32) + b1_ref[...]
    h = jnp.maximum(h, 0.0)

    # fused mu / log_var projection: one lane-dense [TB, 2*ZP] matmul.
    #   lanes [0:z_dim] -> mu ; lanes [ZP:ZP+z_dim] -> log_var ; pad lanes are 0.
    stats = jnp.dot(h.astype(bf16), w23_ref[...],
                    preferred_element_type=jnp.float32) + b23_ref[...]
    mu = stats[:, :ZP]             # register-aligned 128-lane slices (no lane shift)
    log_var = stats[:, ZP:]

    # reparameterize (f32): z = mu + eps * exp(log_var / 2)
    # pad lanes: mu = 0, log_var = 0 (std = 1), eps = 0  =>  z = 0; W4 pad rows are 0.
    z = mu + eps_ref[...] * jnp.exp(log_var * 0.5)

    # decode: h2 = relu(z @ W4 + b4); x_reconst = sigmoid(h2 @ W5 + b5)
    h2 = jnp.dot(z.astype(bf16), w4_ref[...],
                 preferred_element_type=jnp.float32) + b4_ref[...]
    h2 = jnp.maximum(h2, 0.0)
    logits = jnp.dot(h2.astype(bf16), w5_ref[...],
                     preferred_element_type=jnp.float32) + b5_ref[...]

    # sigmoid via a single EUP transcendental: sigmoid(t) = 0.5*tanh(t/2) + 0.5.
    xrec_ref[...] = (jnp.tanh(logits * 0.5) * 0.5 + 0.5).astype(xrec_ref.dtype)
    stats_ref[...] = stats


def prepare_params(params):
    """One-time weight preparation (hoisted out of the per-call forward):
    cast to bf16, fuse fc2/fc3 into one lane-padded [h, 2*ZP] projection, and
    zero-pad the z contraction dim of fc4 to ZP lanes."""
    w1, b1, w2, b2, w3, b3, w4, b4, w5, b5 = params
    bf16, f32 = jnp.bfloat16, jnp.float32
    image_size, h_dim = w1.shape
    z_dim = w2.shape[1]

    w1p = w1.astype(bf16)                                    # (784, 400)
    b1p = jnp.reshape(b1.astype(f32), (1, h_dim))
    w23p = jnp.zeros((h_dim, 2 * ZP), bf16)
    w23p = w23p.at[:, :z_dim].set(w2.astype(bf16))
    w23p = w23p.at[:, ZP:ZP + z_dim].set(w3.astype(bf16))
    b23p = jnp.zeros((1, 2 * ZP), f32)
    b23p = b23p.at[:, :z_dim].set(jnp.reshape(b2.astype(f32), (1, z_dim)))
    b23p = b23p.at[:, ZP:ZP + z_dim].set(jnp.reshape(b3.astype(f32), (1, z_dim)))
    w4p = jnp.zeros((ZP, h_dim), bf16).at[:z_dim, :].set(w4.astype(bf16))
    b4p = jnp.reshape(b4.astype(f32), (1, h_dim))
    w5p = w5.astype(bf16)                                    # (400, 784)
    b5p = jnp.reshape(b5.astype(f32), (1, image_size))
    return (w1p, b1p, w23p, b23p, w4p, b4p, w5p, b5p)


@functools.partial(jax.jit, static_argnums=(3,))
def _vae_forward_impl(x, eps, prepped, tb):
    w1p, b1p, w23p, b23p, w4p, b4p, w5p, b5p = prepped
    B, image_size = x.shape
    z_dim = eps.shape[1]
    h_dim = w1p.shape[1]
    BP = _round_up(B, tb)

    # Batch-only padding of x (no lane padding, no dtype copy of x in HBM).
    x_in = x if BP == B else jnp.pad(x, ((0, BP - B), (0, 0)))
    # eps is tiny (z_dim lanes): pad it to the ZP-lane tile here (negligible traffic).
    eps_in = jnp.pad(eps, ((0, BP - B), (0, ZP - z_dim)))

    def batch_tile(cols):
        return pl.BlockSpec((tb, cols), lambda i: (i, 0))

    def resident(shape):
        # Constant block index => Pallas keeps the block VMEM-resident across steps.
        return pl.BlockSpec(shape, lambda i: (0, 0))

    grid_spec = pltpu.PrefetchScalarGridSpec(
        num_scalar_prefetch=0,
        grid=(BP // tb,),
        in_specs=[
            batch_tile(image_size),         # x          (tb, 784) f32
            batch_tile(ZP),                 # eps        (tb, 128) f32
            resident((image_size, h_dim)),  # W1
            resident((1, h_dim)),           # b1
            resident((h_dim, 2 * ZP)),      # W2 || W3 (fused)
            resident((1, 2 * ZP)),          # b2 || b3 (fused)
            resident((ZP, h_dim)),          # W4 (z rows zero-padded)
            resident((1, h_dim)),           # b4
            resident((h_dim, image_size)),  # W5
            resident((1, image_size)),      # b5
        ],
        out_specs=[
            batch_tile(image_size),         # x_reconst (bf16, natural 784 lanes)
            batch_tile(2 * ZP),             # stats = [mu | log_var] (f32, lane-dense)
        ],
    )

    xrec_p, stats = pl.pallas_call(
        vae_forward_kernel,
        out_shape=(
            jax.ShapeDtypeStruct((BP, image_size), jnp.bfloat16),
            jax.ShapeDtypeStruct((BP, 2 * ZP), jnp.float32),
        ),
        grid_spec=grid_spec,
        compiler_params=pltpu.CompilerParams(
            dimension_semantics=("parallel",),  # shard batch tiles across TCs (v7x)
            vmem_limit_bytes=32 << 20,          # ~6 MiB actually needed
        ),
    )(x_in, eps_in, w1p, b1p, w23p, b23p, w4p, b4p, w5p, b5p)

    # Batch-only slice for x_reconst (no lane slice); mu/log_var slices are tiny.
    x_reconst = xrec_p[:B]
    mu = stats[:B, :z_dim]
    log_var = stats[:B, ZP:ZP + z_dim]
    return x_reconst, mu, log_var


def vae_forward(x, prepped, eps):
    """VAE forward: (x_reconst [bf16], mu, log_var).  `prepped` comes from
    prepare_params(); `eps` plays the role of torch.rand_like in reparameterize."""
    try:
        device_kind = jax.devices()[0].device_kind
    except Exception:
        device_kind = ""
    tb = _pick_batch_tile(x.shape[0], device_kind)
    return _vae_forward_impl(x, eps, prepped, tb)


def init_params(key, image_size=784, h_dim=400, z_dim=20):
    """Deterministic PyTorch-Linear-style init. Weights are pre-transposed to
    [in_features, out_features]; biases are [1, out_features]."""
    dims = [
        (image_size, h_dim),  # fc1
        (h_dim, z_dim),       # fc2
        (h_dim, z_dim),       # fc3
        (z_dim, h_dim),       # fc4
        (h_dim, image_size),  # fc5
    ]
    params = []
    for (fan_in, fan_out) in dims:
        key, kw, kb = jax.random.split(key, 3)
        bound = 1.0 / jnp.sqrt(jnp.float32(fan_in))
        w = jax.random.uniform(kw, (fan_in, fan_out), jnp.float32, -bound, bound)
        b = jax.random.uniform(kb, (1, fan_out), jnp.float32, -bound, bound)
        params.extend([w, b])
    return tuple(params)


def vae_forward_ref(x, params, eps):
    """Plain-JAX f32 reference matching the PyTorch forward semantics."""
    w1, b1, w2, b2, w3, b3, w4, b4, w5, b5 = params
    h = jax.nn.relu(x @ w1 + b1)
    mu = h @ w2 + b2
    log_var = h @ w3 + b3
    z = mu + eps * jnp.exp(log_var / 2)
    h2 = jax.nn.relu(z @ w4 + b4)
    x_reconst = jax.nn.sigmoid(h2 @ w5 + b5)
    return x_reconst, mu, log_var


if __name__ == "__main__":
    image_size, h_dim, z_dim = 784, 400, 20
    batch = 4

    key = jax.random.PRNGKey(0)
    k_param, k_x, k_eps = jax.random.split(key, 3)

    params = init_params(k_param, image_size, h_dim, z_dim)
    prepped = prepare_params(params)        # one-time weight prep (not per call)
    jax.block_until_ready(prepped)

    x = jax.random.uniform(k_x, (batch, image_size), jnp.float32)  # pixels in [0,1)
    # eps ~ U[0,1), matching torch.rand_like in the reference module (intentional).
    eps = jax.random.uniform(k_eps, (batch, z_dim), jnp.float32)

    x_reconst, mu, log_var = vae_forward(x, prepped, eps)
    jax.block_until_ready((x_reconst, mu, log_var))

    assert x_reconst.shape == (batch, image_size)
    assert mu.shape == (batch, z_dim) and log_var.shape == (batch, z_dim)

    # Correctness check vs f32 reference (tolerance covers bf16 MXU inputs/store).
    xr_r, mu_r, lv_r = vae_forward_ref(x, params, eps)
    assert jnp.allclose(x_reconst.astype(jnp.float32), xr_r, atol=5e-2, rtol=5e-2)
    assert jnp.allclose(mu, mu_r, atol=5e-2, rtol=5e-2)
    assert jnp.allclose(log_var, lv_r, atol=5e-2, rtol=5e-2)

    print("KERNEL_OK")
</pallas_src>

<mosaic_0001>
module attributes {stable_mosaic.version = 11 : i64} {
  func.func @vae_forward_kernel(%arg0: i32, %arg1: memref<8x784xf32, #tpu.memory_space<vmem>>, %arg2: memref<8x128xf32, #tpu.memory_space<vmem>>, %arg3: memref<784x400xbf16, #tpu.memory_space<vmem>>, %arg4: memref<1x400xf32, #tpu.memory_space<vmem>>, %arg5: memref<400x256xbf16, #tpu.memory_space<vmem>>, %arg6: memref<1x256xf32, #tpu.memory_space<vmem>>, %arg7: memref<128x400xbf16, #tpu.memory_space<vmem>>, %arg8: memref<1x400xf32, #tpu.memory_space<vmem>>, %arg9: memref<400x784xbf16, #tpu.memory_space<vmem>>, %arg10: memref<1x784xf32, #tpu.memory_space<vmem>>, %arg11: memref<8x784xbf16, #tpu.memory_space<vmem>>, %arg12: memref<8x256xf32, #tpu.memory_space<vmem>>) attributes {dimension_semantics = [#tpu.dimension_semantics<parallel>], iteration_bounds = array<i64: 1>, scalar_prefetch = 0 : i64, scratch_operands = 0 : i64, tpu.core_type = #tpu.core_type<tc>, window_params = [{transform_indices = @transform_0, window_bounds = array<i64: 8, 784>}, {transform_indices = @transform_1, window_bounds = array<i64: 8, 128>}, {pipeline_mode = #tpu.pipeline_mode<synchronous>, transform_indices = @transform_2, window_bounds = array<i64: 784, 400>}, {pipeline_mode = #tpu.pipeline_mode<synchronous>, transform_indices = @transform_3, window_bounds = array<i64: 1, 400>}, {pipeline_mode = #tpu.pipeline_mode<synchronous>, transform_indices = @transform_4, window_bounds = array<i64: 400, 256>}, {pipeline_mode = #tpu.pipeline_mode<synchronous>, transform_indices = @transform_5, window_bounds = array<i64: 1, 256>}, {pipeline_mode = #tpu.pipeline_mode<synchronous>, transform_indices = @transform_6, window_bounds = array<i64: 128, 400>}, {pipeline_mode = #tpu.pipeline_mode<synchronous>, transform_indices = @transform_7, window_bounds = array<i64: 1, 400>}, {pipeline_mode = #tpu.pipeline_mode<synchronous>, transform_indices = @transform_8, window_bounds = array<i64: 400, 784>}, {pipeline_mode = #tpu.pipeline_mode<synchronous>, transform_indices = @transform_9, window_bounds = array<i64: 1, 784>}, {transform_indices = @transform_10, window_bounds = array<i64: 8, 784>}, {transform_indices = @transform_11, window_bounds = array<i64: 8, 256>}]} {
    %c0 = arith.constant 0 : index
    %c0_0 = arith.constant 0 : index
    %0 = vector.load %arg1[%c0, %c0_0] : memref<8x784xf32, #tpu.memory_space<vmem>>, vector<8x784xf32>
    %1 = arith.truncf %0 : vector<8x784xf32> to vector<8x784xbf16>
    %c0_1 = arith.constant 0 : index
    %c0_2 = arith.constant 0 : index
    %2 = vector.load %arg3[%c0_1, %c0_2] : memref<784x400xbf16, #tpu.memory_space<vmem>>, vector<784x400xbf16>
    %cst = arith.constant dense<0.000000e+00> : vector<8x400xf32>
    %3 = tpu.matmul %1, %2, %cst {dimension_numbers = #tpu.dot_dimension_numbers<[1], [0], [0], [1], [0, 0, 1, 1], [], []>} : vector<8x784xbf16>, vector<784x400xbf16>, vector<8x400xf32> -> vector<8x400xf32>
    %c0_3 = arith.constant 0 : index
    %c0_4 = arith.constant 0 : index
    %4 = vector.load %arg4[%c0_3, %c0_4] : memref<1x400xf32, #tpu.memory_space<vmem>>, vector<1x400xf32>
    %5 = vector.broadcast %4 : vector<1x400xf32> to vector<8x400xf32>
    %6 = arith.addf %3, %5 : vector<8x400xf32>
    %cst_5 = arith.constant 0.000000e+00 : f32
    %7 = vector.broadcast %cst_5 : f32 to vector<8x400xf32>
    %8 = arith.maximumf %6, %7 : vector<8x400xf32>
    %9 = arith.truncf %8 : vector<8x400xf32> to vector<8x400xbf16>
    %c0_6 = arith.constant 0 : index
    %c0_7 = arith.constant 0 : index
    %10 = vector.load %arg5[%c0_6, %c0_7] : memref<400x256xbf16, #tpu.memory_space<vmem>>, vector<400x256xbf16>
    %cst_8 = arith.constant dense<0.000000e+00> : vector<8x256xf32>
    %11 = tpu.matmul %9, %10, %cst_8 {dimension_numbers = #tpu.dot_dimension_numbers<[1], [0], [0], [1], [0, 0, 1, 1], [], []>} : vector<8x400xbf16>, vector<400x256xbf16>, vector<8x256xf32> -> vector<8x256xf32>
    %c0_9 = arith.constant 0 : index
    %c0_10 = arith.constant 0 : index
    %12 = vector.load %arg6[%c0_9, %c0_10] : memref<1x256xf32, #tpu.memory_space<vmem>>, vector<1x256xf32>
    %13 = vector.broadcast %12 : vector<1x256xf32> to vector<8x256xf32>
    %14 = arith.addf %11, %13 : vector<8x256xf32>
    %15 = vector.extract_strided_slice %14 {offsets = [0, 0], sizes = [8, 128], strides = [1, 1]} : vector<8x256xf32> to vector<8x128xf32>
    %16 = vector.extract_strided_slice %14 {offsets = [0, 128], sizes = [8, 128], strides = [1, 1]} : vector<8x256xf32> to vector<8x128xf32>
    %c0_11 = arith.constant 0 : index
    %c0_12 = arith.constant 0 : index
    %17 = vector.load %arg2[%c0_11, %c0_12] : memref<8x128xf32, #tpu.memory_space<vmem>>, vector<8x128xf32>
    %cst_13 = arith.constant 5.000000e-01 : f32
    %18 = vector.broadcast %cst_13 : f32 to vector<8x128xf32>
    %19 = arith.mulf %16, %18 : vector<8x128xf32>
    %20 = math.exp %19 : vector<8x128xf32>
    %21 = arith.mulf %17, %20 : vector<8x128xf32>
    %22 = arith.addf %15, %21 : vector<8x128xf32>
    %23 = arith.truncf %22 : vector<8x128xf32> to vector<8x128xbf16>
    %c0_14 = arith.constant 0 : index
    %c0_15 = arith.constant 0 : index
    %24 = vector.load %arg7[%c0_14, %c0_15] : memref<128x400xbf16, #tpu.memory_space<vmem>>, vector<128x400xbf16>
    %cst_16 = arith.constant dense<0.000000e+00> : vector<8x400xf32>
    %25 = tpu.matmul %23, %24, %cst_16 {dimension_numbers = #tpu.dot_dimension_numbers<[1], [0], [0], [1], [0, 0, 1, 1], [], []>} : vector<8x128xbf16>, vector<128x400xbf16>, vector<8x400xf32> -> vector<8x400xf32>
    %c0_17 = arith.constant 0 : index
    %c0_18 = arith.constant 0 : index
    %26 = vector.load %arg8[%c0_17, %c0_18] : memref<1x400xf32, #tpu.memory_space<vmem>>, vector<1x400xf32>
    %27 = vector.broadcast %26 : vector<1x400xf32> to vector<8x400xf32>
    %28 = arith.addf %25, %27 : vector<8x400xf32>
    %cst_19 = arith.constant 0.000000e+00 : f32
    %29 = vector.broadcast %cst_19 : f32 to vector<8x400xf32>
    %30 = arith.maximumf %28, %29 : vector<8x400xf32>
    %31 = arith.truncf %30 : vector<8x400xf32> to vector<8x400xbf16>
    %c0_20 = arith.constant 0 : index
    %c0_21 = arith.constant 0 : index
    %32 = vector.load %arg9[%c0_20, %c0_21] : memref<400x784xbf16, #tpu.memory_space<vmem>>, vector<400x784xbf16>
    %cst_22 = arith.constant dense<0.000000e+00> : vector<8x784xf32>
    %33 = tpu.matmul %31, %32, %cst_22 {dimension_numbers = #tpu.dot_dimension_numbers<[1], [0], [0], [1], [0, 0, 1, 1], [], []>} : vector<8x400xbf16>, vector<400x784xbf16>, vector<8x784xf32> -> vector<8x784xf32>
    %c0_23 = arith.constant 0 : index
    %c0_24 = arith.constant 0 : index
    %34 = vector.load %arg10[%c0_23, %c0_24] : memref<1x784xf32, #tpu.memory_space<vmem>>, vector<1x784xf32>
    %35 = vector.broadcast %34 : vector<1x784xf32> to vector<8x784xf32>
    %36 = arith.addf %33, %35 : vector<8x784xf32>
    %cst_25 = arith.constant 5.000000e-01 : f32
    %37 = vector.broadcast %cst_25 : f32 to vector<8x784xf32>
    %38 = arith.mulf %36, %37 : vector<8x784xf32>
    %39 = math.tanh %38 : vector<8x784xf32>
    %cst_26 = arith.constant 5.000000e-01 : f32
    %40 = vector.broadcast %cst_26 : f32 to vector<8x784xf32>
    %41 = arith.mulf %39, %40 : vector<8x784xf32>
    %cst_27 = arith.constant 5.000000e-01 : f32
    %42 = vector.broadcast %cst_27 : f32 to vector<8x784xf32>
    %43 = arith.addf %41, %42 : vector<8x784xf32>
    %44 = arith.truncf %43 : vector<8x784xf32> to vector<8x784xbf16>
    %c0_28 = arith.constant 0 : index
    %c0_29 = arith.constant 0 : index
    %45 = vector.load %arg11[%c0_28, %c0_29] : memref<8x784xbf16, #tpu.memory_space<vmem>>, vector<8x784xbf16>
    tpu.vector_store %arg11[%c0_28, %c0_29], %44 {strides = array<i32>} : memref<8x784xbf16, #tpu.memory_space<vmem>>, vector<8x784xbf16>,
    %c0_30 = arith.constant 0 : index
    %c0_31 = arith.constant 0 : index
    %46 = vector.load %arg12[%c0_30, %c0_31] : memref<8x256xf32, #tpu.memory_space<vmem>>, vector<8x256xf32>
    tpu.vector_store %arg12[%c0_30, %c0_31], %14 {strides = array<i32>} : memref<8x256xf32, #tpu.memory_space<vmem>>, vector<8x256xf32>,
    return
  }
  func.func @transform_0(%arg0: i32) -> (i32, i32) {
    %c0_i32 = arith.constant 0 : i32
    %c0_i32_0 = arith.constant 0 : i32
    return %arg0, %c0_i32 : i32, i32
  }
  func.func @transform_1(%arg0: i32) -> (i32, i32) {
    %c0_i32 = arith.constant 0 : i32
    %c0_i32_0 = arith.constant 0 : i32
    return %arg0, %c0_i32 : i32, i32
  }
  func.func @transform_2(%arg0: i32) -> (i32, i32) {
    %c0_i32 = arith.constant 0 : i32
    %c0_i32_0 = arith.constant 0 : i32
    %c0_i32_1 = arith.constant 0 : i32
    return %c0_i32, %c0_i32_0 : i32, i32
  }
  func.func @transform_3(%arg0: i32) -> (i32, i32) {
    %c0_i32 = arith.constant 0 : i32
    %c0_i32_0 = arith.constant 0 : i32
    %c0_i32_1 = arith.constant 0 : i32
    return %c0_i32, %c0_i32_0 : i32, i32
  }
  func.func @transform_4(%arg0: i32) -> (i32, i32) {
    %c0_i32 = arith.constant 0 : i32
    %c0_i32_0 = arith.constant 0 : i32
    %c0_i32_1 = arith.constant 0 : i32
    return %c0_i32, %c0_i32_0 : i32, i32
  }
  func.func @transform_5(%arg0: i32) -> (i32, i32) {
    %c0_i32 = arith.constant 0 : i32
    %c0_i32_0 = arith.constant 0 : i32
    %c0_i32_1 = arith.constant 0 : i32
    return %c0_i32, %c0_i32_0 : i32, i32
  }
  func.func @transform_6(%arg0: i32) -> (i32, i32) {
    %c0_i32 = arith.constant 0 : i32
    %c0_i32_0 = arith.constant 0 : i32
    %c0_i32_1 = arith.constant 0 : i32
    return %c0_i32, %c0_i32_0 : i32, i32
  }
  func.func @transform_7(%arg0: i32) -> (i32, i32) {
    %c0_i32 = arith.constant 0 : i32
    %c0_i32_0 = arith.constant 0 : i32
    %c0_i32_1 = arith.constant 0 : i32
    return %c0_i32, %c0_i32_0 : i32, i32
  }
  func.func @transform_8(%arg0: i32) -> (i32, i32) {
    %c0_i32 = arith.constant 0 : i32
    %c0_i32_0 = arith.constant 0 : i32
    %c0_i32_1 = arith.constant 0 : i32
    return %c0_i32, %c0_i32_0 : i32, i32
  }
  func.func @transform_9(%arg0: i32) -> (i32, i32) {
    %c0_i32 = arith.constant 0 : i32
    %c0_i32_0 = arith.constant 0 : i32
    %c0_i32_1 = arith.constant 0 : i32
    return %c0_i32, %c0_i32_0 : i32, i32
  }
  func.func @transform_10(%arg0: i32) -> (i32, i32) {
    %c0_i32 = arith.constant 0 : i32
    %c0_i32_0 = arith.constant 0 : i32
    return %arg0, %c0_i32 : i32, i32
  }
  func.func @transform_11(%arg0: i32) -> (i32, i32) {
    %c0_i32 = arith.constant 0 : i32
    %c0_i32_0 = arith.constant 0 : i32
    return %arg0, %c0_i32 : i32, i32
  }
}

</mosaic_0001>

<bundles_post_ra>
// kernel: _vae_forward_impl.1
= control target key start
LH: loop header
LB: loop body
LE: loop exit
PB: predicated region body
PF: predicated region fallthrough
CT: control target
= control target key end

     0   :  { %vm1250_vm0 = vcmask 130048   ;;  %vm3824_vm1 = vcmask 125952   ;;  %s6626_s2 = inlined_call_operand.vmem [shape: bf16[784,400], index: 2, kind: input, shape index: {}]   ;;  %s6627_s0 = inlined_call_operand.vmem [shape: f32[8,784], index: 0, kind: input, shape index: {}]   ;;  %s6628_s4 = inlined_call_operand.vmem [shape: bf16[400,256], index: 4, kind: input, shape index: {}]   ;;  %s6629_s6 = inlined_call_operand.vmem [shape: bf16[128,400], index: 6, kind: input, shape index: {}]   ;;  %s6630_s3 = inlined_call_operand.vmem [shape: f32[1,400], index: 3, kind: input, shape index: {}]   ;;  %s6631_s8 = inlined_call_operand.vmem [shape: bf16[400,784], index: 8, kind: input, shape index: {}]   ;;  %s6632_s5 = inlined_call_operand.vmem [shape: f32[1,256], index: 5, kind: input, shape index: {}]   ;;  %s6633_s11 = inlined_call_operand.vmem [shape: f32[8,256], index: 11, kind: output, shape index: {1}]   ;;  %s6634_s1 = inlined_call_operand.vmem [shape: f32[8,128], index: 1, kind: input, shape index: {}]   ;;  %s6635_s7 = inlined_call_operand.vmem [shape: f32[1,400], index: 7, kind: input, shape index: {}]   ;;  %s6636_s9 = inlined_call_operand.vmem [shape: f32[1,784], index: 9, kind: input, shape index: {}]   ;;  %s6637_s10 = inlined_call_operand.vmem [shape: bf16[8,784], index: 10, kind: output, shape index: {0}]  }
   0x1   :  { %v4379_v0 = vld [vmem:[%s6626_s2 + $0x4] ss:$16 sps:$4 sm:$0xff]   ;;  %v4381_v1 = vld [vmem:[%s6626_s2 + $0xc] ss:$16 sps:$4 sm:$0xff]   ;;  %v4383_v2 = vld [vmem:[%s6626_s2] ss:$16 sps:$4 sm:$0xff]  }
   0x2   :  { %1254 = vmatprep.subr.bf16.mxu0 %v4379_v0  ;;  %v4384_v3 = vld [vmem:[%s6626_s2 + $0x8] ss:$16 sps:$4 sm:$0xff]   ;;  %1418 = vmatprep.subr.bf16.mxu1 %v4381_v1  ;;  %v4385_v4 = vld [vmem:[%s6626_s2 + $0x24] ss:$16 sps:$4 sm:$0xff]   ;;  %v4387_v5 = vld [vmem:[%s6626_s2 + $0x2c] ss:$16 sps:$4 sm:$0xff]  }
   0x3   :  { %1255 = vmatpush1.bf16.msra.mxu0 %v4383_v2  ;;  %1419 = vmatpush1.bf16.msra.mxu1 %v4384_v3  ;;  %v4389_v6 = vld [vmem:[%s6626_s2 + $0x20] ss:$16 sps:$4 sm:$0xff]   ;;  %v4390_v7 = vld [vmem:[%s6626_s2 + $0x28] ss:$16 sps:$4 sm:$0xff]   ;;  %v4391_v8 = vld [vmem:[%s6626_s2 + $0x44] ss:$16 sps:$4 sm:$0xff]  }
   0x4   :  { %1256 = vmatprep.subr.bf16.mxu0 %v4385_v4  ;;  %1420 = vmatprep.subr.bf16.mxu1 %v4387_v5  ;;  %v4393_v9 = vld [vmem:[%s6626_s2 + $0x4c] ss:$16 sps:$4 sm:$0xff]   ;;  %v4395_v10 = vld [vmem:[%s6626_s2 + $0x40] ss:$16 sps:$4 sm:$0xff]   ;;  %v4396_v11 = vld [vmem:[%s6626_s2 + $0x48] ss:$16 sps:$4 sm:$0xff]  }
   0x5   :  { %v4397_v12 = vld [vmem:[%s6626_s2 + $0x64] ss:$16 sps:$4 sm:$0xff]   ;;  %v4399_v13 = vld [vmem:[%s6626_s2 + $0x6c] ss:$16 sps:$4 sm:$0xff]   ;;  %v4401_v14 = vld [vmem:[%s6626_s2 + $0x60] ss:$16 sps:$4 sm:$0xff]  }
   0x6   :  { %v4402_v15 = vld [vmem:[%s6626_s2 + $0x68] ss:$16 sps:$4 sm:$0xff]   ;;  %v4403_v16 = vld [vmem:[%s6626_s2 + $0x84] ss:$16 sps:$4 sm:$0xff]   ;;  %v4405_v17 = vld [vmem:[%s6626_s2 + $0x8c] ss:$16 sps:$4 sm:$0xff]  }
   0x7   :  { %1257 = vmatpush1.bf16.msra.mxu0 %v4389_v6  ;;  %1421 = vmatpush1.bf16.msra.mxu1 %v4390_v7  ;;  %v4407_v18 = vld [vmem:[%s6626_s2 + $0x80] ss:$16 sps:$4 sm:$0xff]   ;;  %v4408_v19 = vld [vmem:[%s6626_s2 + $0x88] ss:$16 sps:$4 sm:$0xff]   ;;  %v4409_v20 = vld [vmem:[%s6626_s2 + $0xa4] ss:$16 sps:$4 sm:$0xff]  }
   0x8   :  { %1258 = vmatprep.subr.bf16.mxu0 %v4391_v8  ;;  %1422 = vmatprep.subr.bf16.mxu1 %v4393_v9  ;;  %v4411_v21 = vld [vmem:[%s6626_s2 + $0xac] ss:$16 sps:$4 sm:$0xff]   ;;  %v4413_v22 = vld [vmem:[%s6626_s2 + $0xa0] ss:$16 sps:$4 sm:$0xff]   ;;  %v4414_v23 = vld [vmem:[%s6626_s2 + $0xa8] ss:$16 sps:$4 sm:$0xff]  }
   0x9   :  { %v4415_v24 = vld [vmem:[%s6626_s2 + $0xc4] ss:$16 sps:$4 sm:$0xff]   ;;  %v4417_v25 = vld [vmem:[%s6626_s2 + $0xcc] ss:$16 sps:$4 sm:$0xff]   ;;  %v4419_v26 = vld [vmem:[%s6626_s2 + $0xc0] ss:$16 sps:$4 sm:$0xff]  }
   0xa   :  { %v4420_v27 = vld [vmem:[%s6626_s2 + $0xc8] ss:$16 sps:$4 sm:$0xff]   ;;  %v4421_v28 = vld [vmem:[%s6626_s2 + $0xe4] ss:$16 sps:$4 sm:$0xff]   ;;  %v4423_v29 = vld [vmem:[%s6626_s2 + $0xec] ss:$16 sps:$4 sm:$0xff]  }
   0xb   :  { %1259 = vmatpush1.bf16.msra.mxu0 %v4395_v10  ;;  %1423 = vmatpush1.bf16.msra.mxu1 %v4396_v11  ;;  %v4425_v30 = vld [vmem:[%s6626_s2 + $0xe0] ss:$16 sps:$4 sm:$0xff]   ;;  %v4426_v31 = vld [vmem:[%s6626_s2 + $0xe8] ss:$16 sps:$4 sm:$0xff]   ;;  %v4427_v32 = vld [vmem:[%s6626_s2 + $0x104] ss:$16 sps:$4 sm:$0xff]  }
   0xc   :  { %1260 = vmatprep.subr.bf16.mxu0 %v4397_v12  ;;  %1424 = vmatprep.subr.bf16.mxu1 %v4399_v13  ;;  %v4429_v33 = vld [vmem:[%s6626_s2 + $0x10c] ss:$16 sps:$4 sm:$0xff]   ;;  %v4431_v34 = vld [vmem:[%s6626_s2 + $0x100] ss:$16 sps:$4 sm:$0xff]   ;;  %v4432_v35 = vld [vmem:[%s6626_s2 + $0x108] ss:$16 sps:$4 sm:$0xff]  }
   0xd   :  { %v4433_v36 = vld [vmem:[%s6626_s2 + $0x124] ss:$16 sps:$4 sm:$0xff]   ;;  %v4435_v37 = vld [vmem:[%s6626_s2 + $0x12c] ss:$16 sps:$4 sm:$0xff]   ;;  %v4437_v38 = vld [vmem:[%s6626_s2 + $0x120] ss:$16 sps:$4 sm:$0xff]  }
   0xe   :  { %v4438_v39 = vld [vmem:[%s6626_s2 + $0x128] ss:$16 sps:$4 sm:$0xff]   ;;  %v4439_v40 = vld [vmem:[%s6626_s2 + $0x144] ss:$16 sps:$4 sm:$0xff]   ;;  %v4441_v41 = vld [vmem:[%s6626_s2 + $0x14c] ss:$16 sps:$4 sm:$0xff]  }
   0xf   :  { %1261 = vmatpush1.bf16.msra.mxu0 %v4401_v14  ;;  %1425 = vmatpush1.bf16.msra.mxu1 %v4402_v15  ;;  %v4443_v42 = vld [vmem:[%s6626_s2 + $0x140] ss:$16 sps:$4 sm:$0xff]   ;;  %v4444_v43 = vld [vmem:[%s6626_s2 + $0x148] ss:$16 sps:$4 sm:$0xff]   ;;  %v4445_v44 = vld [vmem:[%s6626_s2 + $0x164] ss:$16 sps:$4 sm:$0xff]  }
  0x10   :  { %1262 = vmatprep.subr.bf16.mxu0 %v4403_v16  ;;  %1426 = vmatprep.subr.bf16.mxu1 %v4405_v17  ;;  %v4447_v45 = vld [vmem:[%s6626_s2 + $0x16c] ss:$16 sps:$4 sm:$0xff]   ;;  %v4449_v47 = vld [vmem:[%s6626_s2 + $0x160] ss:$16 sps:$4 sm:$0xff]   ;;  %v4450_v49 = vld [vmem:[%s6626_s2 + $0x168] ss:$16 sps:$4 sm:$0xff]  }
  0x11   :  { %v39_v46 = vld [vmem:[%s6627_s0 + $0x8] sm:$0xff]  ;;  %v4451_v50 = vld [vmem:[%s6626_s2 + $0x184] ss:$16 sps:$4 sm:$0xff]   ;;  %v4455_v52 = vld [vmem:[%s6626_s2 + $0x180] ss:$16 sps:$4 sm:$0xff]  }
  0x12   :  { %v46_v48 = vpack.c.bf16 %v39_v46, %v39_v46  ;;  %v4453_v51 = vld [vmem:[%s6626_s2 + $0x18c] ss:$16 sps:$4 sm:$0xff]   ;;  %v4456_v53 = vld [vmem:[%s6626_s2 + $0x188] ss:$16 sps:$4 sm:$0xff]   ;;  %v4457_v54 = vld [vmem:[%s6626_s2 + $0x1a4] ss:$16 sps:$4 sm:$0xff]  }
  0x13   :  { %1263 = vmatpush1.bf16.msra.mxu0 %v4407_v18  ;;  %1427 = vmatpush1.bf16.msra.mxu1 %v4408_v19  ;;  %v4459_v55 = vld [vmem:[%s6626_s2 + $0x1ac] ss:$16 sps:$4 sm:$0xff]   ;;  %v4461_v56 = vld [vmem:[%s6626_s2 + $0x1a0] ss:$16 sps:$4 sm:$0xff]   ;;  %v4462_v57 = vld [vmem:[%s6626_s2 + $0x1a8] ss:$16 sps:$4 sm:$0xff]  }
  0x14   :  { %1264 = vmatprep.subr.bf16.mxu0 %v4409_v20  ;;  %1428 = vmatprep.subr.bf16.mxu1 %v4411_v21  ;;  %v4463_v58 = vld [vmem:[%s6626_s2 + $0x1c4] ss:$16 sps:$4 sm:$0xff]   ;;  %v4465_v59 = vld [vmem:[%s6626_s2 + $0x1cc] ss:$16 sps:$4 sm:$0xff]   ;;  %v4467_v60 = vld [vmem:[%s6626_s2 + $0x1c0] ss:$16 sps:$4 sm:$0xff]  }
  0x15   :  { %1286 = vmatprep.mubr.bf16.mxu0 %v46_v48  ;;  %1450 = vmatprep.mubr.bf16.mxu1 %v46_v48  ;;  %v4468_v61 = vld [vmem:[%s6626_s2 + $0x1c8] ss:$16 sps:$4 sm:$0xff]   ;;  %v4469_v62 = vld [vmem:[%s6626_s2 + $0x1e4] ss:$16 sps:$4 sm:$0xff]   ;;  %v4471_v63 = vld [vmem:[%s6626_s2 + $0x1ec] ss:$16 sps:$4 sm:$0xff]  }
  0x16   :  { %v4473_v0 = vld [vmem:[%s6626_s2 + $0x1e0] ss:$16 sps:$4 sm:$0xff]   ;;  %v4474_v1 = vld [vmem:[%s6626_s2 + $0x1e8] ss:$16 sps:$4 sm:$0xff]   ;;  %v4477_v3 = vld [vmem:[%s6626_s2 + $0x204] ss:$16 sps:$4 sm:$0xff]  }
  0x17   :  { %1265 = vmatpush1.bf16.msra.mxu0 %v4413_v22  ;;  %1429 = vmatpush1.bf16.msra.mxu1 %v4414_v23  ;;  %v38_v2 = vld [vmem:[%s6627_s0] sm:$0xff]  ;;  %v4480_v4 = vld [vmem:[%s6626_s2 + $0x20c] ss:$16 sps:$4 sm:$0xff]   ;;  %v4478_v7 = vld [vmem:[%s6626_s2 + $0x208] ss:$16 sps:$4 sm:$0xff]  }
  0x18   :  { %1266 = vmatprep.subr.bf16.mxu0 %v4415_v24  ;;  %1430 = vmatprep.subr.bf16.mxu1 %v4417_v25  ;;  %v45_v5 = vpack.c.bf16 %v38_v2, %v38_v2  ;;  %v4475_v6 = vld [vmem:[%s6626_s2 + $0x200] ss:$16 sps:$4 sm:$0xff]   ;;  %v4483_v8 = vld [vmem:[%s6626_s2 + $0x224] ss:$16 sps:$4 sm:$0xff]   ;;  %v4486_v9 = vld [vmem:[%s6626_s2 + $0x22c] ss:$16 sps:$4 sm:$0xff]  }
  0x19   :  { %v4481_v10 = vld [vmem:[%s6626_s2 + $0x220] ss:$16 sps:$4 sm:$0xff]   ;;  %v4484_v11 = vld [vmem:[%s6626_s2 + $0x228] ss:$16 sps:$4 sm:$0xff]   ;;  %v4489_v12 = vld [vmem:[%s6626_s2 + $0x244] ss:$16 sps:$4 sm:$0xff]  }
  0x1a   :  { %v4492_v13 = vld [vmem:[%s6626_s2 + $0x24c] ss:$16 sps:$4 sm:$0xff]   ;;  %v4487_v14 = vld [vmem:[%s6626_s2 + $0x240] ss:$16 sps:$4 sm:$0xff]   ;;  %v4490_v15 = vld [vmem:[%s6626_s2 + $0x248] ss:$16 sps:$4 sm:$0xff]  }
  0x1b   :  { %1267 = vmatpush1.bf16.msra.mxu0 %v4419_v26  ;;  %1431 = vmatpush1.bf16.msra.mxu1 %v4420_v27  ;;  %v4495_v16 = vld [vmem:[%s6626_s2 + $0x264] ss:$16 sps:$4 sm:$0xff]   ;;  %v4498_v17 = vld [vmem:[%s6626_s2 + $0x26c] ss:$16 sps:$4 sm:$0xff]   ;;  %v4493_v18 = vld [vmem:[%s6626_s2 + $0x260] ss:$16 sps:$4 sm:$0xff]  }
  0x1c   :  { %1268 = vmatprep.subr.bf16.mxu0 %v4421_v28  ;;  %1432 = vmatprep.subr.bf16.mxu1 %v4423_v29  ;;  %v4496_v19 = vld [vmem:[%s6626_s2 + $0x268] ss:$16 sps:$4 sm:$0xff]   ;;  %v4501_v20 = vld [vmem:[%s6626_s2 + $0x284] ss:$16 sps:$4 sm:$0xff]   ;;  %v4504_v21 = vld [vmem:[%s6626_s2 + $0x28c] ss:$16 sps:$4 sm:$0xff]  }
  0x1d   :  { %v4499_v22 = vld [vmem:[%s6626_s2 + $0x280] ss:$16 sps:$4 sm:$0xff]   ;;  %v4502_v23 = vld [vmem:[%s6626_s2 + $0x288] ss:$16 sps:$4 sm:$0xff]   ;;  %v4507_v24 = vld [vmem:[%s6626_s2 + $0x2a4] ss:$16 sps:$4 sm:$0xff]  }
  0x1e   :  { %v4510_v25 = vld [vmem:[%s6626_s2 + $0x2ac] ss:$16 sps:$4 sm:$0xff]   ;;  %v4505_v26 = vld [vmem:[%s6626_s2 + $0x2a0] ss:$16 sps:$4 sm:$0xff]   ;;  %v4508_v27 = vld [vmem:[%s6626_s2 + $0x2a8] ss:$16 sps:$4 sm:$0xff]  }
  0x1f   :  { %1269 = vmatpush1.bf16.msra.mxu0 %v4425_v30  ;;  %1433 = vmatpush1.bf16.msra.mxu1 %v4426_v31  ;;  %v4513_v28 = vld [vmem:[%s6626_s2 + $0x2c4] ss:$16 sps:$4 sm:$0xff]   ;;  %v4516_v29 = vld [vmem:[%s6626_s2 + $0x2cc] ss:$16 sps:$4 sm:$0xff]   ;;  %v4511_v31 = vld [vmem:[%s6626_s2 + $0x2c0] ss:$16 sps:$4 sm:$0xff]  }
  0x20   :  { %1270 = vmatprep.subr.bf16.mxu0 %v4427_v32  ;;  %1434 = vmatprep.subr.bf16.mxu1 %v4429_v33  ;;  %v41_v30 = vld [vmem:[%s6627_s0 + $0x18] sm:$0xff]  ;;  %v4537_v46 = vld [vmem:[%s6626_s2 + $0x344] ss:$16 sps:$4 sm:$0xff]   ;;  %v4535_v48 = vld [vmem:[%s6626_s2 + $0x340] ss:$16 sps:$4 sm:$0xff]  }
  0x21   :  { %v48_v32 = vpack.c.bf16 %v41_v30, %v41_v30  ;;  %v4514_v33 = vld [vmem:[%s6626_s2 + $0x2c8] ss:$16 sps:$4 sm:$0xff]   ;;  %v4567_v2 = vld [vmem:[%s6626_s2 + $0x3e4] ss:$16 sps:$4 sm:$0xff]  }
  0x22   :  { %v4603_v30 = vld [vmem:[%s6626_s2 + $0x4a4] ss:$16 sps:$4 sm:$0xff]  }
  0x23   :  { %1271 = vmatpush1.bf16.msra.mxu0 %v4431_v34  ;;  %1435 = vmatpush1.bf16.msra.mxu1 %v4432_v35  ;;  %v4519_v34 = vld [vmem:[%s6626_s2 + $0x2e4] ss:$16 sps:$4 sm:$0xff]   ;;  %v4522_v35 = vld [vmem:[%s6626_s2 + $0x2ec] ss:$16 sps:$4 sm:$0xff]  }
  0x24   :  { %1272 = vmatprep.subr.bf16.mxu0 %v4433_v36  ;;  %1436 = vmatprep.subr.bf16.mxu1 %v4435_v37  ;;  %v4517_v36 = vld [vmem:[%s6626_s2 + $0x2e0] ss:$16 sps:$4 sm:$0xff]   ;;  %v4520_v37 = vld [vmem:[%s6626_s2 + $0x2e8] ss:$16 sps:$4 sm:$0xff]  }
  0x27   :  { %1273 = vmatpush1.bf16.msra.mxu0 %v4437_v38  ;;  %1437 = vmatpush1.bf16.msra.mxu1 %v4438_v39  ;;  %v4525_v38 = vld [vmem:[%s6626_s2 + $0x304] ss:$16 sps:$4 sm:$0xff]   ;;  %v4528_v39 = vld [vmem:[%s6626_s2 + $0x30c] ss:$16 sps:$4 sm:$0xff]  }
  0x28   :  { %1274 = vmatprep.subr.bf16.mxu0 %v4439_v40  ;;  %1438 = vmatprep.subr.bf16.mxu1 %v4441_v41  ;;  %v4523_v40 = vld [vmem:[%s6626_s2 + $0x300] ss:$16 sps:$4 sm:$0xff]   ;;  %v4526_v41 = vld [vmem:[%s6626_s2 + $0x308] ss:$16 sps:$4 sm:$0xff]  }
  0x2b   :  { %1275 = vmatpush1.bf16.msra.mxu0 %v4443_v42  ;;  %1439 = vmatpush1.bf16.msra.mxu1 %v4444_v43  ;;  %v4531_v42 = vld [vmem:[%s6626_s2 + $0x324] ss:$16 sps:$4 sm:$0xff]   ;;  %v4534_v43 = vld [vmem:[%s6626_s2 + $0x32c] ss:$16 sps:$4 sm:$0xff]  }
  0x2c   :  { %1276 = vmatprep.subr.bf16.mxu0 %v4445_v44  ;;  %1440 = vmatprep.subr.bf16.mxu1 %v4447_v45  ;;  %v4529_v44 = vld [vmem:[%s6626_s2 + $0x320] ss:$16 sps:$4 sm:$0xff]   ;;  %v4532_v45 = vld [vmem:[%s6626_s2 + $0x328] ss:$16 sps:$4 sm:$0xff]  }
  0x2f   :  { %1277 = vmatpush1.bf16.msra.mxu0 %v4449_v47  ;;  %1441 = vmatpush1.bf16.msra.mxu1 %v4450_v49  ;;  %v4540_v47 = vld [vmem:[%s6626_s2 + $0x34c] ss:$16 sps:$4 sm:$0xff]   ;;  %v4538_v49 = vld [vmem:[%s6626_s2 + $0x348] ss:$16 sps:$4 sm:$0xff]  }
  0x30   :  { %1278 = vmatprep.subr.bf16.mxu0 %v4451_v50  ;;  %1442 = vmatprep.subr.bf16.mxu1 %v4453_v51  ;;  %v4543_v50 = vld [vmem:[%s6626_s2 + $0x364] ss:$16 sps:$4 sm:$0xff]   ;;  %v4546_v51 = vld [vmem:[%s6626_s2 + $0x36c] ss:$16 sps:$4 sm:$0xff]  }
  0x33   :  { %1279 = vmatpush1.bf16.msra.mxu0 %v4455_v52  ;;  %1443 = vmatpush1.bf16.msra.mxu1 %v4456_v53  ;;  %v4541_v52 = vld [vmem:[%s6626_s2 + $0x360] ss:$16 sps:$4 sm:$0xff]   ;;  %v4544_v53 = vld [vmem:[%s6626_s2 + $0x368] ss:$16 sps:$4 sm:$0xff]  }
  0x34   :  { %1280 = vmatprep.subr.bf16.mxu0 %v4457_v54  ;;  %1444 = vmatprep.subr.bf16.mxu1 %v4459_v55  ;;  %v4549_v54 = vld [vmem:[%s6626_s2 + $0x384] ss:$16 sps:$4 sm:$0xff]   ;;  %v4552_v55 = vld [vmem:[%s6626_s2 + $0x38c] ss:$16 sps:$4 sm:$0xff]  }
  0x37   :  { %1281 = vmatpush1.bf16.msra.mxu0 %v4461_v56  ;;  %1445 = vmatpush1.bf16.msra.mxu1 %v4462_v57  ;;  %v4547_v56 = vld [vmem:[%s6626_s2 + $0x380] ss:$16 sps:$4 sm:$0xff]   ;;  %v4550_v57 = vld [vmem:[%s6626_s2 + $0x388] ss:$16 sps:$4 sm:$0xff]  }
  0x38   :  { %1282 = vmatprep.subr.bf16.mxu0 %v4463_v58  ;;  %1446 = vmatprep.subr.bf16.mxu1 %v4465_v59  ;;  %v4555_v58 = vld [vmem:[%s6626_s2 + $0x3a4] ss:$16 sps:$4 sm:$0xff]   ;;  %v4558_v59 = vld [vmem:[%s6626_s2 + $0x3ac] ss:$16 sps:$4 sm:$0xff]  }
  0x3b   :  { %1283 = vmatpush1.bf16.msra.mxu0 %v4467_v60  ;;  %1447 = vmatpush1.bf16.msra.mxu1 %v4468_v61  ;;  %v4553_v60 = vld [vmem:[%s6626_s2 + $0x3a0] ss:$16 sps:$4 sm:$0xff]   ;;  %v4556_v61 = vld [vmem:[%s6626_s2 + $0x3a8] ss:$16 sps:$4 sm:$0xff]  }
  0x3c   :  { %1284 = vmatprep.subr.bf16.mxu0 %v4469_v62  ;;  %1448 = vmatprep.subr.bf16.mxu1 %v4471_v63  ;;  %v4561_v62 = vld [vmem:[%s6626_s2 + $0x3c4] ss:$16 sps:$4 sm:$0xff]   ;;  %v4564_v63 = vld [vmem:[%s6626_s2 + $0x3cc] ss:$16 sps:$4 sm:$0xff]  }
  0x3f   :  { %1285 = vmatpush1.bf16.msra.mxu0 %v4473_v0  ;;  %1449 = vmatpush1.bf16.msra.mxu1 %v4474_v1  ;;  %v4559_v0 = vld [vmem:[%s6626_s2 + $0x3c0] ss:$16 sps:$4 sm:$0xff]   ;;  %v4562_v1 = vld [vmem:[%s6626_s2 + $0x3c8] ss:$16 sps:$4 sm:$0xff]  }
  0x40   :  { %1295 = vmatprep.subr.bf16.mxu0 %v4477_v3  ;;  %1459 = vmatprep.subr.bf16.mxu1 %v4480_v4  ;;  %v4570_v3 = vld [vmem:[%s6626_s2 + $0x3ec] ss:$16 sps:$4 sm:$0xff]   ;;  %v4565_v4 = vld [vmem:[%s6626_s2 + $0x3e0] ss:$16 sps:$4 sm:$0xff]  }
  0x42   :  { %1287 = vmatmul.mubr.bf16.vlgmr.msra.gmra.mrb[0].mxu0 %v45_v5  ;;  %1451 = vmatmul.mubr.bf16.vlgmr.msra.gmra.mrb[0].mxu1 %v45_v5  ;;  %v4568_v5 = vld [vmem:[%s6626_s2 + $0x3e8] ss:$16 sps:$4 sm:$0xff]  }
  0x43   :  { %1296 = vmatpush1.bf16.msra.mxu0 %v4475_v6  ;;  %1460 = vmatpush1.bf16.msra.mxu1 %v4478_v7  ;;  %v4573_v6 = vld [vmem:[%s6626_s2 + $0x404] ss:$16 sps:$4 sm:$0xff]  }
  0x44   :  { %1297 = vmatprep.subr.bf16.mxu0 %v4483_v8  ;;  %1461 = vmatprep.subr.bf16.mxu1 %v4486_v9  ;;  %v40_v7 = vld [vmem:[%s6627_s0 + $0x10] sm:$0xff]  ;;  %v4576_v8 = vld [vmem:[%s6626_s2 + $0x40c] ss:$16 sps:$4 sm:$0xff]  }
  0x45   :  { %1327 = vmatprep.mubr.bf16.mxu0 %v48_v32  ;;  %1491 = vmatprep.mubr.bf16.mxu1 %v48_v32  ;;  %v4571_v9 = vld [vmem:[%s6626_s2 + $0x400] ss:$16 sps:$4 sm:$0xff]  }
  0x46   :  { %v4601_v32 = vld [vmem:[%s6626_s2 + $0x4a0] ss:$16 sps:$4 sm:$0xff]  }
  0x47   :  { %1298 = vmatpush1.bf16.msra.mxu0 %v4481_v10  ;;  %1462 = vmatpush1.bf16.msra.mxu1 %v4484_v11  ;;  %v47_v10 = vpack.c.bf16 %v40_v7, %v40_v7  ;;  %v4574_v11 = vld [vmem:[%s6626_s2 + $0x408] ss:$16 sps:$4 sm:$0xff]   ;;  %v4666_v7 = vld [vmem:[%s6626_s2 + $0x5ec] ss:$16 sps:$4 sm:$0xff]  }
  0x48   :  { %1299 = vmatprep.subr.bf16.mxu0 %v4489_v12  ;;  %1463 = vmatprep.subr.bf16.mxu1 %v4492_v13  ;;  %v4579_v12 = vld [vmem:[%s6626_s2 + $0x424] ss:$16 sps:$4 sm:$0xff]   ;;  %v4582_v13 = vld [vmem:[%s6626_s2 + $0x42c] ss:$16 sps:$4 sm:$0xff]  }
  0x4b   :  { %1300 = vmatpush1.bf16.msra.mxu0 %v4487_v14  ;;  %1464 = vmatpush1.bf16.msra.mxu1 %v4490_v15  ;;  %v43_v14 = vld [vmem:[%s6627_s0 + $0x28] sm:$0xff] }
  0x4c   :  { %1301 = vmatprep.subr.bf16.mxu0 %v4495_v16  ;;  %1465 = vmatprep.subr.bf16.mxu1 %v4498_v17  ;;  %v50_v15 = vpack.c.bf16 %v43_v14, %v43_v14  ;;  %v4577_v16 = vld [vmem:[%s6626_s2 + $0x420] ss:$16 sps:$4 sm:$0xff]   ;;  %v4580_v17 = vld [vmem:[%s6626_s2 + $0x428] ss:$16 sps:$4 sm:$0xff]  }
  0x4d   :  { %v4667_v14 = vld [vmem:[%s6626_s2 + $0x600] ss:$16 sps:$4 sm:$0xff]  }
  0x4f   :  { %1302 = vmatpush1.bf16.msra.mxu0 %v4493_v18  ;;  %1466 = vmatpush1.bf16.msra.mxu1 %v4496_v19  ;;  %v4585_v18 = vld [vmem:[%s6626_s2 + $0x444] ss:$16 sps:$4 sm:$0xff]   ;;  %v4588_v19 = vld [vmem:[%s6626_s2 + $0x44c] ss:$16 sps:$4 sm:$0xff]  }
  0x50   :  { %1303 = vmatprep.subr.bf16.mxu0 %v4501_v20  ;;  %1467 = vmatprep.subr.bf16.mxu1 %v4504_v21  ;;  %v4583_v20 = vld [vmem:[%s6626_s2 + $0x440] ss:$16 sps:$4 sm:$0xff]   ;;  %v4586_v21 = vld [vmem:[%s6626_s2 + $0x448] ss:$16 sps:$4 sm:$0xff]  }
  0x53   :  { %1304 = vmatpush1.bf16.msra.mxu0 %v4499_v22  ;;  %1468 = vmatpush1.bf16.msra.mxu1 %v4502_v23  ;;  %v4591_v22 = vld [vmem:[%s6626_s2 + $0x464] ss:$16 sps:$4 sm:$0xff]   ;;  %v4594_v23 = vld [vmem:[%s6626_s2 + $0x46c] ss:$16 sps:$4 sm:$0xff]  }
  0x54   :  { %1305 = vmatprep.subr.bf16.mxu0 %v4507_v24  ;;  %1469 = vmatprep.subr.bf16.mxu1 %v4510_v25  ;;  %v4589_v24 = vld [vmem:[%s6626_s2 + $0x460] ss:$16 sps:$4 sm:$0xff]   ;;  %v4592_v25 = vld [vmem:[%s6626_s2 + $0x468] ss:$16 sps:$4 sm:$0xff]  }
  0x57   :  { %1306 = vmatpush1.bf16.msra.mxu0 %v4505_v26  ;;  %1470 = vmatpush1.bf16.msra.mxu1 %v4508_v27  ;;  %v4597_v26 = vld [vmem:[%s6626_s2 + $0x484] ss:$16 sps:$4 sm:$0xff]   ;;  %v4600_v27 = vld [vmem:[%s6626_s2 + $0x48c] ss:$16 sps:$4 sm:$0xff]  }
  0x58   :  { %1307 = vmatprep.subr.bf16.mxu0 %v4513_v28  ;;  %1471 = vmatprep.subr.bf16.mxu1 %v4516_v29  ;;  %v4595_v28 = vld [vmem:[%s6626_s2 + $0x480] ss:$16 sps:$4 sm:$0xff]   ;;  %v4598_v29 = vld [vmem:[%s6626_s2 + $0x488] ss:$16 sps:$4 sm:$0xff]  }
  0x5b   :  { %1308 = vmatpush1.bf16.msra.mxu0 %v4511_v31  ;;  %1472 = vmatpush1.bf16.msra.mxu1 %v4514_v33  ;;  %v4606_v31 = vld [vmem:[%s6626_s2 + $0x4ac] ss:$16 sps:$4 sm:$0xff]   ;;  %v4604_v33 = vld [vmem:[%s6626_s2 + $0x4a8] ss:$16 sps:$4 sm:$0xff]  }
  0x5c   :  { %1309 = vmatprep.subr.bf16.mxu0 %v4519_v34  ;;  %1473 = vmatprep.subr.bf16.mxu1 %v4522_v35  ;;  %v4609_v34 = vld [vmem:[%s6626_s2 + $0x4c4] ss:$16 sps:$4 sm:$0xff]   ;;  %v4612_v35 = vld [vmem:[%s6626_s2 + $0x4cc] ss:$16 sps:$4 sm:$0xff]  }
  0x5f   :  { %1310 = vmatpush1.bf16.msra.mxu0 %v4517_v36  ;;  %1474 = vmatpush1.bf16.msra.mxu1 %v4520_v37  ;;  %v4607_v36 = vld [vmem:[%s6626_s2 + $0x4c0] ss:$16 sps:$4 sm:$0xff]   ;;  %v4610_v37 = vld [vmem:[%s6626_s2 + $0x4c8] ss:$16 sps:$4 sm:$0xff]  }
  0x60   :  { %1311 = vmatprep.subr.bf16.mxu0 %v4525_v38  ;;  %1475 = vmatprep.subr.bf16.mxu1 %v4528_v39  ;;  %v4615_v38 = vld [vmem:[%s6626_s2 + $0x4e4] ss:$16 sps:$4 sm:$0xff]   ;;  %v4618_v39 = vld [vmem:[%s6626_s2 + $0x4ec] ss:$16 sps:$4 sm:$0xff]  }
  0x63   :  { %1312 = vmatpush1.bf16.msra.mxu0 %v4523_v40  ;;  %1476 = vmatpush1.bf16.msra.mxu1 %v4526_v41  ;;  %v4613_v40 = vld [vmem:[%s6626_s2 + $0x4e0] ss:$16 sps:$4 sm:$0xff]   ;;  %v4616_v41 = vld [vmem:[%s6626_s2 + $0x4e8] ss:$16 sps:$4 sm:$0xff]  }
  0x64   :  { %1313 = vmatprep.subr.bf16.mxu0 %v4531_v42  ;;  %1477 = vmatprep.subr.bf16.mxu1 %v4534_v43  ;;  %v4621_v42 = vld [vmem:[%s6626_s2 + $0x504] ss:$16 sps:$4 sm:$0xff]   ;;  %v4624_v43 = vld [vmem:[%s6626_s2 + $0x50c] ss:$16 sps:$4 sm:$0xff]  }
  0x67   :  { %1314 = vmatpush1.bf16.msra.mxu0 %v4529_v44  ;;  %1478 = vmatpush1.bf16.msra.mxu1 %v4532_v45  ;;  %v4619_v44 = vld [vmem:[%s6626_s2 + $0x500] ss:$16 sps:$4 sm:$0xff]   ;;  %v4622_v45 = vld [vmem:[%s6626_s2 + $0x508] ss:$16 sps:$4 sm:$0xff]  }
  0x68   :  { %1315 = vmatprep.subr.bf16.mxu0 %v4537_v46  ;;  %1479 = vmatprep.subr.bf16.mxu1 %v4540_v47  ;;  %v4627_v46 = vld [vmem:[%s6626_s2 + $0x524] ss:$16 sps:$4 sm:$0xff]   ;;  %v4630_v47 = vld [vmem:[%s6626_s2 + $0x52c] ss:$16 sps:$4 sm:$0xff]  }
  0x6b   :  { %1316 = vmatpush1.bf16.msra.mxu0 %v4535_v48  ;;  %1480 = vmatpush1.bf16.msra.mxu1 %v4538_v49  ;;  %v4625_v48 = vld [vmem:[%s6626_s2 + $0x520] ss:$16 sps:$4 sm:$0xff]   ;;  %v4628_v49 = vld [vmem:[%s6626_s2 + $0x528] ss:$16 sps:$4 sm:$0xff]  }
  0x6c   :  { %1317 = vmatprep.subr.bf16.mxu0 %v4543_v50  ;;  %1481 = vmatprep.subr.bf16.mxu1 %v4546_v51  ;;  %v4633_v50 = vld [vmem:[%s6626_s2 + $0x544] ss:$16 sps:$4 sm:$0xff]   ;;  %v4636_v51 = vld [vmem:[%s6626_s2 + $0x54c] ss:$16 sps:$4 sm:$0xff]  }
  0x6f   :  { %1318 = vmatpush1.bf16.msra.mxu0 %v4541_v52  ;;  %1482 = vmatpush1.bf16.msra.mxu1 %v4544_v53  ;;  %v4631_v52 = vld [vmem:[%s6626_s2 + $0x540] ss:$16 sps:$4 sm:$0xff]   ;;  %v4634_v53 = vld [vmem:[%s6626_s2 + $0x548] ss:$16 sps:$4 sm:$0xff]  }
  0x70   :  { %1319 = vmatprep.subr.bf16.mxu0 %v4549_v54  ;;  %1483 = vmatprep.subr.bf16.mxu1 %v4552_v55  ;;  %v4639_v54 = vld [vmem:[%s6626_s2 + $0x564] ss:$16 sps:$4 sm:$0xff]   ;;  %v4642_v55 = vld [vmem:[%s6626_s2 + $0x56c] ss:$16 sps:$4 sm:$0xff]  }
  0x73   :  { %1320 = vmatpush1.bf16.msra.mxu0 %v4547_v56  ;;  %1484 = vmatpush1.bf16.msra.mxu1 %v4550_v57  ;;  %v4637_v56 = vld [vmem:[%s6626_s2 + $0x560] ss:$16 sps:$4 sm:$0xff]   ;;  %v4640_v57 = vld [vmem:[%s6626_s2 + $0x568] ss:$16 sps:$4 sm:$0xff]  }
  0x74   :  { %1321 = vmatprep.subr.bf16.mxu0 %v4555_v58  ;;  %1485 = vmatprep.subr.bf16.mxu1 %v4558_v59  ;;  %v4645_v58 = vld [vmem:[%s6626_s2 + $0x584] ss:$16 sps:$4 sm:$0xff]   ;;  %v4648_v59 = vld [vmem:[%s6626_s2 + $0x58c] ss:$16 sps:$4 sm:$0xff]  }
  0x77   :  { %1322 = vmatpush1.bf16.msra.mxu0 %v4553_v60  ;;  %1486 = vmatpush1.bf16.msra.mxu1 %v4556_v61  ;;  %v4643_v60 = vld [vmem:[%s6626_s2 + $0x580] ss:$16 sps:$4 sm:$0xff]   ;;  %v4646_v61 = vld [vmem:[%s6626_s2 + $0x588] ss:$16 sps:$4 sm:$0xff]  }
  0x78   :  { %1323 = vmatprep.subr.bf16.mxu0 %v4561_v62  ;;  %1487 = vmatprep.subr.bf16.mxu1 %v4564_v63  ;;  %v4651_v62 = vld [vmem:[%s6626_s2 + $0x5a4] ss:$16 sps:$4 sm:$0xff]   ;;  %v4654_v63 = vld [vmem:[%s6626_s2 + $0x5ac] ss:$16 sps:$4 sm:$0xff]  }
  0x7b   :  { %1324 = vmatpush1.bf16.msra.mxu0 %v4559_v0  ;;  %1488 = vmatpush1.bf16.msra.mxu1 %v4562_v1  ;;  %v4649_v0 = vld [vmem:[%s6626_s2 + $0x5a0] ss:$16 sps:$4 sm:$0xff]   ;;  %v4652_v1 = vld [vmem:[%s6626_s2 + $0x5a8] ss:$16 sps:$4 sm:$0xff]  }
  0x7c   :  { %1325 = vmatprep.subr.bf16.mxu0 %v4567_v2  ;;  %1489 = vmatprep.subr.bf16.mxu1 %v4570_v3  ;;  %v4657_v2 = vld [vmem:[%s6626_s2 + $0x5c4] ss:$16 sps:$4 sm:$0xff]   ;;  %v4660_v3 = vld [vmem:[%s6626_s2 + $0x5cc] ss:$16 sps:$4 sm:$0xff]  }
  0x7f   :  { %1326 = vmatpush1.bf16.msra.mxu0 %v4565_v4  ;;  %1490 = vmatpush1.bf16.msra.mxu1 %v4568_v5  ;;  %v4655_v4 = vld [vmem:[%s6626_s2 + $0x5c0] ss:$16 sps:$4 sm:$0xff]   ;;  %v4658_v5 = vld [vmem:[%s6626_s2 + $0x5c8] ss:$16 sps:$4 sm:$0xff]  }
  0x80   :  { %1336 = vmatprep.subr.bf16.mxu0 %v4573_v6  ;;  %1500 = vmatprep.subr.bf16.mxu1 %v4576_v8  ;;  %v4663_v6 = vld [vmem:[%s6626_s2 + $0x5e4] ss:$16 sps:$4 sm:$0xff]   ;;  %v4661_v8 = vld [vmem:[%s6626_s2 + $0x5e0] ss:$16 sps:$4 sm:$0xff]  }
  0x82   :  { %1328 = vmatmul.mubr.bf16.vlgmr.msra.gmra.mrb[0].mxu0 %v47_v10  ;;  %1492 = vmatmul.mubr.bf16.vlgmr.msra.gmra.mrb[0].mxu1 %v47_v10  ;;  %v42_v10 = vld [vmem:[%s6627_s0 + $0x20] sm:$0xff] }
  0x83   :  { %1337 = vmatpush1.bf16.msra.mxu0 %v4571_v9  ;;  %1501 = vmatpush1.bf16.msra.mxu1 %v4574_v11  ;;  %v4664_v9 = vld [vmem:[%s6626_s2 + $0x5e8] ss:$16 sps:$4 sm:$0xff]   ;;  %v4669_v11 = vld [vmem:[%s6626_s2 + $0x604] ss:$16 sps:$4 sm:$0xff]  }
  0x84   :  { %1338 = vmatprep.subr.bf16.mxu0 %v4579_v12  ;;  %1502 = vmatprep.subr.bf16.mxu1 %v4582_v13  ;;  %v4672_v12 = vld [vmem:[%s6626_s2 + $0x60c] ss:$16 sps:$4 sm:$0xff]   ;;  %v49_v13 = vpack.c.bf16 %v42_v10, %v42_v10 }
  0x85   :  { %1368 = vmatprep.mubr.bf16.mxu0 %v50_v15  ;;  %1532 = vmatprep.mubr.bf16.mxu1 %v50_v15  ;;  %v4670_v15 = vld [vmem:[%s6626_s2 + $0x608] ss:$16 sps:$4 sm:$0xff]  }
  0x87   :  { %1339 = vmatpush1.bf16.msra.mxu0 %v4577_v16  ;;  %1503 = vmatpush1.bf16.msra.mxu1 %v4580_v17  ;;  %v4675_v16 = vld [vmem:[%s6628_s4 + $0x4] ss:$8 sps:$4 sm:$0xff]   ;;  %v5062_v17 = vmov 0  }
  0x88   :  { %1340 = vmatprep.subr.bf16.mxu0 %v4585_v18  ;;  %1504 = vmatprep.subr.bf16.mxu1 %v4588_v19  ;;  %v44_v18 = vld [vmem:[%s6627_s0 + $0x30] sm:$0xff] }
  0x89   :  { %v51_v19 = vpack.c.bf16 %v44_v18, %v44_v18 }
  0x8b   :  { %1341 = vmatpush1.bf16.msra.mxu0 %v4583_v20  ;;  %1505 = vmatpush1.bf16.msra.mxu1 %v4586_v21  ;;  %v4673_v20 = vld [vmem:[%s6628_s4] ss:$8 sps:$4 sm:$0xff]   ;;  %v4678_v21 = vld [vmem:[%s6628_s4 + $0x14] ss:$8 sps:$4 sm:$0xff]  }
  0x8c   :  { %1342 = vmatprep.subr.bf16.mxu0 %v4591_v22  ;;  %1506 = vmatprep.subr.bf16.mxu1 %v4594_v23  ;;  %v4676_v22 = vld [vmem:[%s6628_s4 + $0x10] ss:$8 sps:$4 sm:$0xff]   ;;  %v4681_v23 = vld [vmem:[%s6628_s4 + $0x24] ss:$8 sps:$4 sm:$0xff]  }
  0x8f   :  { %1343 = vmatpush1.bf16.msra.mxu0 %v4589_v24  ;;  %1507 = vmatpush1.bf16.msra.mxu1 %v4592_v25  ;;  %v4679_v24 = vld [vmem:[%s6628_s4 + $0x20] ss:$8 sps:$4 sm:$0xff]   ;;  %v4684_v25 = vld [vmem:[%s6628_s4 + $0x34] ss:$8 sps:$4 sm:$0xff]  }
  0x90   :  { %1344 = vmatprep.subr.bf16.mxu0 %v4597_v26  ;;  %1508 = vmatprep.subr.bf16.mxu1 %v4600_v27  ;;  %v4682_v26 = vld [vmem:[%s6628_s4 + $0x30] ss:$8 sps:$4 sm:$0xff]   ;;  %v4687_v27 = vld [vmem:[%s6628_s4 + $0x44] ss:$8 sps:$4 sm:$0xff]  }
  0x93   :  { %1345 = vmatpush1.bf16.msra.mxu0 %v4595_v28  ;;  %1509 = vmatpush1.bf16.msra.mxu1 %v4598_v29  ;;  %v4685_v28 = vld [vmem:[%s6628_s4 + $0x40] ss:$8 sps:$4 sm:$0xff]   ;;  %v4690_v29 = vld [vmem:[%s6628_s4 + $0x54] ss:$8 sps:$4 sm:$0xff]  }
  0x94   :  { %1346 = vmatprep.subr.bf16.mxu0 %v4603_v30  ;;  %1510 = vmatprep.subr.bf16.mxu1 %v4606_v31  ;;  %v4688_v30 = vld [vmem:[%s6628_s4 + $0x50] ss:$8 sps:$4 sm:$0xff]   ;;  %v4693_v31 = vld [vmem:[%s6628_s4 + $0x64] ss:$8 sps:$4 sm:$0xff]  }
  0x97   :  { %1347 = vmatpush1.bf16.msra.mxu0 %v4601_v32  ;;  %1511 = vmatpush1.bf16.msra.mxu1 %v4604_v33  ;;  %v4691_v32 = vld [vmem:[%s6628_s4 + $0x60] ss:$8 sps:$4 sm:$0xff]   ;;  %v4696_v33 = vld [vmem:[%s6628_s4 + $0x74] ss:$8 sps:$4 sm:$0xff]  }
  0x98   :  { %1348 = vmatprep.subr.bf16.mxu0 %v4609_v34  ;;  %1512 = vmatprep.subr.bf16.mxu1 %v4612_v35  ;;  %v4694_v34 = vld [vmem:[%s6628_s4 + $0x70] ss:$8 sps:$4 sm:$0xff]   ;;  %v4699_v35 = vld [vmem:[%s6628_s4 + $0x84] ss:$8 sps:$4 sm:$0xff]  }
  0x9b   :  { %1349 = vmatpush1.bf16.msra.mxu0 %v4607_v36  ;;  %1513 = vmatpush1.bf16.msra.mxu1 %v4610_v37  ;;  %v4697_v36 = vld [vmem:[%s6628_s4 + $0x80] ss:$8 sps:$4 sm:$0xff]   ;;  %v4702_v37 = vld [vmem:[%s6628_s4 + $0x94] ss:$8 sps:$4 sm:$0xff]  }
  0x9c   :  { %1350 = vmatprep.subr.bf16.mxu0 %v4615_v38  ;;  %1514 = vmatprep.subr.bf16.mxu1 %v4618_v39  ;;  %v4700_v38 = vld [vmem:[%s6628_s4 + $0x90] ss:$8 sps:$4 sm:$0xff]   ;;  %v4705_v39 = vld [vmem:[%s6628_s4 + $0xa4] ss:$8 sps:$4 sm:$0xff]  }
  0x9f   :  { %1351 = vmatpush1.bf16.msra.mxu0 %v4613_v40  ;;  %1515 = vmatpush1.bf16.msra.mxu1 %v4616_v41  ;;  %v4703_v40 = vld [vmem:[%s6628_s4 + $0xa0] ss:$8 sps:$4 sm:$0xff]   ;;  %v4708_v41 = vld [vmem:[%s6628_s4 + $0xb4] ss:$8 sps:$4 sm:$0xff]  }
  0xa0   :  { %1352 = vmatprep.subr.bf16.mxu0 %v4621_v42  ;;  %1516 = vmatprep.subr.bf16.mxu1 %v4624_v43  ;;  %v4706_v42 = vld [vmem:[%s6628_s4 + $0xb0] ss:$8 sps:$4 sm:$0xff]   ;;  %v4711_v43 = vld [vmem:[%s6628_s4 + $0xc4] ss:$8 sps:$4 sm:$0xff]  }
  0xa3   :  { %1353 = vmatpush1.bf16.msra.mxu0 %v4619_v44  ;;  %1517 = vmatpush1.bf16.msra.mxu1 %v4622_v45  ;;  %v4709_v44 = vld [vmem:[%s6628_s4 + $0xc0] ss:$8 sps:$4 sm:$0xff]   ;;  %v4714_v45 = vld [vmem:[%s6628_s4 + $0xd4] ss:$8 sps:$4 sm:$0xff]  }
  0xa4   :  { %1354 = vmatprep.subr.bf16.mxu0 %v4627_v46  ;;  %1518 = vmatprep.subr.bf16.mxu1 %v4630_v47  ;;  %v4712_v46 = vld [vmem:[%s6628_s4 + $0xd0] ss:$8 sps:$4 sm:$0xff]   ;;  %v4717_v47 = vld [vmem:[%s6628_s4 + $0xe4] ss:$8 sps:$4 sm:$0xff]  }
  0xa7   :  { %1355 = vmatpush1.bf16.msra.mxu0 %v4625_v48  ;;  %1519 = vmatpush1.bf16.msra.mxu1 %v4628_v49  ;;  %v4715_v48 = vld [vmem:[%s6628_s4 + $0xe0] ss:$8 sps:$4 sm:$0xff]   ;;  %v4720_v49 = vld [vmem:[%s6628_s4 + $0xf4] ss:$8 sps:$4 sm:$0xff]  }
  0xa8   :  { %1356 = vmatprep.subr.bf16.mxu0 %v4633_v50  ;;  %1520 = vmatprep.subr.bf16.mxu1 %v4636_v51  ;;  %v4718_v50 = vld [vmem:[%s6628_s4 + $0xf0] ss:$8 sps:$4 sm:$0xff]   ;;  %v4723_v51 = vld [vmem:[%s6628_s4 + $0x104] ss:$8 sps:$4 sm:$0xff]  }
  0xab   :  { %1357 = vmatpush1.bf16.msra.mxu0 %v4631_v52  ;;  %1521 = vmatpush1.bf16.msra.mxu1 %v4634_v53  ;;  %v4748_v52 = vld [vmem:[%s6629_s6] ss:$16 sps:$4 sm:$0xff]   ;;  %v4750_v53 = vld [vmem:[%s6629_s6 + $0x4] ss:$16 sps:$4 sm:$0xff]  }
  0xac   :  { %1358 = vmatprep.subr.bf16.mxu0 %v4639_v54  ;;  %1522 = vmatprep.subr.bf16.mxu1 %v4642_v55  ;;  %v4751_v54 = vld [vmem:[%s6629_s6 + $0x20] ss:$16 sps:$4 sm:$0xff]   ;;  %v4753_v55 = vld [vmem:[%s6629_s6 + $0x24] ss:$16 sps:$4 sm:$0xff]  }
  0xaf   :  { %1359 = vmatpush1.bf16.msra.mxu0 %v4637_v56  ;;  %1523 = vmatpush1.bf16.msra.mxu1 %v4640_v57  ;;  %v250_v56 = vlaneseq }
  0xb0   :  { %1360 = vmatprep.subr.bf16.mxu0 %v4645_v58  ;;  %1524 = vmatprep.subr.bf16.mxu1 %v4648_v59  ;;  %v248_v59 = vld [vmem:[%s6630_s3] sm:$0xf] }
  0xb1   :  { %v5848_v57 = vshrl.u32 %v250_v56, 7  ;;  %v4805_v56 = vld [vmem:[%s6631_s8 + $0x40] ss:$28 sps:$4 sm:$0xff]  }
  0xb3   :  { %1361 = vmatpush1.bf16.msra.mxu0 %v4643_v60  ;;  %1525 = vmatpush1.bf16.msra.mxu1 %v4646_v61  ;;  %v5851_v58 = vsub.s32 0, %v5848_v57  ;;  %v5857_v60 = vsub.s32 1, %v5848_v57  ;;  %v5860_v61 = vsub.s32 3, %v5848_v57 }
  0xb4   :  { %1362 = vmatprep.subr.bf16.mxu0 %v4651_v62  ;;  %1526 = vmatprep.subr.bf16.mxu1 %v4654_v63 }
  0xb5   :  { %v253_v62 = vrot.slane %v248_v59, %v5851_v58  ;;  %v257_v63 = vrot.slane %v248_v59, %v5857_v60 }
  0xb7   :  { %1363 = vmatpush1.bf16.msra.mxu0 %v4649_v0  ;;  %1527 = vmatpush1.bf16.msra.mxu1 %v4652_v1  ;;  %v265_v0 = vrot.slane %v248_v59, %v5860_v61 }
  0xb8   :  { %1364 = vmatprep.subr.bf16.mxu0 %v4657_v2  ;;  %1528 = vmatprep.subr.bf16.mxu1 %v4660_v3 }
  0xbb   :  { %1365 = vmatpush1.bf16.msra.mxu0 %v4655_v4  ;;  %1529 = vmatpush1.bf16.msra.mxu1 %v4658_v5 }
  0xbc   :  { %1366 = vmatprep.subr.bf16.mxu0 %v4663_v6  ;;  %1530 = vmatprep.subr.bf16.mxu1 %v4666_v7 }
  0xbf   :  { %1367 = vmatpush1.bf16.msra.mxu0 %v4661_v8  ;;  %1531 = vmatpush1.bf16.msra.mxu1 %v4664_v9 }
  0xc0   :  { %1377 = vmatprep.subr.bf16.mxu0 %v4669_v11  ;;  %1541 = vmatprep.subr.bf16.mxu1 %v4672_v12 }
  0xc2   :  { %1369 = vmatmul.mubr.bf16.vlgmr.msra.gmra.mrb[0].mxu0 %v49_v13  ;;  %1533 = vmatmul.mubr.bf16.vlgmr.msra.gmra.mrb[0].mxu1 %v49_v13 }
  0xc3   :  { %1378 = vmatpush1.bf16.msra.mxu0 %v4667_v14  ;;  %1542 = vmatpush1.bf16.msra.mxu1 %v4670_v15 }
  0xc4   :  { %1409 = vmatprep.mubr.bf16.mxu0 %v5062_v17  ;;  %1573 = vmatprep.mubr.bf16.mxu1 %v5062_v17 }
  0xc5   :  { %1905 = vmatprep.subr.bf16.mxu0 %v4675_v16  ;;  %2208 = vmatprep.subr.bf16.mxu1 %v4750_v53  ;;  %v4721_v16 = vld [vmem:[%s6628_s4 + $0x100] ss:$8 sps:$4 sm:$0xff]   ;;  %v4774_v53 = vld [vmem:[%s6629_s6 + $0xc] ss:$16 sps:$4 sm:$0xff]  }
  0xce   :  { %4032 = vmatmul.mubr.msk.bf16.vlgmr.msra.gmra.mrb[0].mxu0 %vm1250_vm0, %v51_v19  ;;  %4033 = vmatmul.mubr.msk.bf16.vlgmr.msra.gmra.mrb[0].mxu1 %vm1250_vm0, %v51_v19  ;;  %v4726_v19 = vld [vmem:[%s6628_s4 + $0x114] ss:$8 sps:$4 sm:$0xff]  }
  0xcf   :  { %1906 = vmatpush1.bf16.msra.mxu0 %v4673_v20  ;;  %2240 = vmatprep.mubr.bf16.mxu1 %v5062_v17 }
  0xd0   :  { %1907 = vmatprep.subr.bf16.mxu0 %v4678_v21  ;;  %2209 = vmatpush1.bf16.msra.mxu1 %v4748_v52  ;;  %v4724_v21 = vld [vmem:[%s6628_s4 + $0x110] ss:$8 sps:$4 sm:$0xff]  }
  0xd1   :  { %2210 = vmatprep.subr.bf16.mxu1 %v4753_v55  ;;  %v4769_v52 = vld [vmem:[%s6629_s6 + $0xe0] ss:$16 sps:$4 sm:$0xff]   ;;  %v4801_v55 = vld [vmem:[%s6631_s8 + $0xc] ss:$28 sps:$4 sm:$0xff]  }
  0xd3   :  { %1908 = vmatpush1.bf16.msra.mxu0 %v4676_v22  ;;  %v4729_v22 = vld [vmem:[%s6628_s4 + $0x124] ss:$8 sps:$4 sm:$0xff]  }
  0xd4   :  { %1909 = vmatprep.subr.bf16.mxu0 %v4681_v23  ;;  %2211 = vmatpush1.bf16.msra.mxu1 %v4751_v54  ;;  %v4727_v23 = vld [vmem:[%s6628_s4 + $0x120] ss:$8 sps:$4 sm:$0xff]  }
  0xd5   :  { %v4799_v54 = vld [vmem:[%s6631_s8 + $0x8] ss:$28 sps:$4 sm:$0xff]  }
  0xd7   :  { %1910 = vmatpush1.bf16.msra.mxu0 %v4679_v24  ;;  %v4732_v24 = vld [vmem:[%s6628_s4 + $0x134] ss:$8 sps:$4 sm:$0xff]  }
  0xd8   :  { %1911 = vmatprep.subr.bf16.mxu0 %v4684_v25  ;;  %v4730_v25 = vld [vmem:[%s6628_s4 + $0x130] ss:$8 sps:$4 sm:$0xff]  }
  0xdb   :  { %1912 = vmatpush1.bf16.msra.mxu0 %v4682_v26  ;;  %v4735_v26 = vld [vmem:[%s6628_s4 + $0x144] ss:$8 sps:$4 sm:$0xff]  }
  0xdc   :  { %1913 = vmatprep.subr.bf16.mxu0 %v4687_v27  ;;  %v4733_v27 = vld [vmem:[%s6628_s4 + $0x140] ss:$8 sps:$4 sm:$0xff]  }
  0xdf   :  { %1914 = vmatpush1.bf16.msra.mxu0 %v4685_v28  ;;  %v4738_v28 = vld [vmem:[%s6628_s4 + $0x154] ss:$8 sps:$4 sm:$0xff]  }
  0xe0   :  { %1915 = vmatprep.subr.bf16.mxu0 %v4690_v29  ;;  %v4736_v29 = vld [vmem:[%s6628_s4 + $0x150] ss:$8 sps:$4 sm:$0xff]  }
  0xe3   :  { %1916 = vmatpush1.bf16.msra.mxu0 %v4688_v30  ;;  %v5900_v30 = vsub.s32 2, %v5848_v57 }
  0xe4   :  { %1917 = vmatprep.subr.bf16.mxu0 %v4693_v31  ;;  %v4741_v31 = vld [vmem:[%s6628_s4 + $0x164] ss:$8 sps:$4 sm:$0xff]  }
  0xe7   :  { %1918 = vmatpush1.bf16.msra.mxu0 %v4691_v32  ;;  %v4739_v32 = vld [vmem:[%s6628_s4 + $0x160] ss:$8 sps:$4 sm:$0xff]  }
  0xe8   :  { %1919 = vmatprep.subr.bf16.mxu0 %v4696_v33  ;;  %v261_v33 = vrot.slane %v248_v59, %v5900_v30  ;;  %v4807_v59 = vld [vmem:[%s6631_s8 + $0x44] ss:$28 sps:$4 sm:$0xff]  }
  0xeb   :  { %1920 = vmatpush1.bf16.msra.mxu0 %v4694_v34  ;;  %v4744_v34 = vld [vmem:[%s6628_s4 + $0x174] ss:$8 sps:$4 sm:$0xff]  }
  0xec   :  { %1921 = vmatprep.subr.bf16.mxu0 %v4699_v35  ;;  %v4742_v35 = vld [vmem:[%s6628_s4 + $0x170] ss:$8 sps:$4 sm:$0xff]  }
  0xef   :  { %1922 = vmatpush1.bf16.msra.mxu0 %v4697_v36 }
  0xf0   :  { %1923 = vmatprep.subr.bf16.mxu0 %v4702_v37  ;;  %v4747_v37 = vld [vmem:[%s6628_s4 + $0x184] ss:$8 sps:$4 sm:$0xff]  }
  0xf3   :  { %1924 = vmatpush1.bf16.msra.mxu0 %v4700_v38  ;;  %v4745_v38 = vld [vmem:[%s6628_s4 + $0x180] ss:$8 sps:$4 sm:$0xff]  }
  0xf4   :  { %1925 = vmatprep.subr.bf16.mxu0 %v4705_v39 }
  0xf7   :  { %1926 = vmatpush1.bf16.msra.mxu0 %v4703_v40 }
  0xf8   :  { %1927 = vmatprep.subr.bf16.mxu0 %v4708_v41  ;;  %v4756_v41 = vld [vmem:[%s6629_s6 + $0x44] ss:$16 sps:$4 sm:$0xff]  }
  0xf9   :  { %2212 = vmatprep.subr.bf16.mxu1 %v4756_v41  ;;  %v4777_v41 = vld [vmem:[%s6629_s6 + $0x2c] ss:$16 sps:$4 sm:$0xff]  }
  0xfb   :  { %1928 = vmatpush1.bf16.msra.mxu0 %v4706_v42  ;;  %v4754_v42 = vld [vmem:[%s6629_s6 + $0x40] ss:$16 sps:$4 sm:$0xff]  }
  0xfc   :  { %1929 = vmatprep.subr.bf16.mxu0 %v4711_v43  ;;  %2213 = vmatpush1.bf16.msra.mxu1 %v4754_v42  ;;  %v4759_v43 = vld [vmem:[%s6629_s6 + $0x64] ss:$16 sps:$4 sm:$0xff]   ;;  %v4775_v42 = vld [vmem:[%s6629_s6 + $0x28] ss:$16 sps:$4 sm:$0xff]  }
  0xfd   :  { %2214 = vmatprep.subr.bf16.mxu1 %v4759_v43  ;;  %v4780_v43 = vld [vmem:[%s6629_s6 + $0x4c] ss:$16 sps:$4 sm:$0xff]  }
  0xff   :  { %1930 = vmatpush1.bf16.msra.mxu0 %v4709_v44  ;;  %v4757_v44 = vld [vmem:[%s6629_s6 + $0x60] ss:$16 sps:$4 sm:$0xff]  }
 0x100   :  { %1931 = vmatprep.subr.bf16.mxu0 %v4714_v45  ;;  %2215 = vmatpush1.bf16.msra.mxu1 %v4757_v44  ;;  %v4762_v45 = vld [vmem:[%s6629_s6 + $0x84] ss:$16 sps:$4 sm:$0xff]   ;;  %v4778_v44 = vld [vmem:[%s6629_s6 + $0x48] ss:$16 sps:$4 sm:$0xff]  }
 0x101   :  { %2216 = vmatprep.subr.bf16.mxu1 %v4762_v45  ;;  %v4783_v45 = vld [vmem:[%s6629_s6 + $0x6c] ss:$16 sps:$4 sm:$0xff]  }
 0x103   :  { %1932 = vmatpush1.bf16.msra.mxu0 %v4712_v46  ;;  %v4760_v46 = vld [vmem:[%s6629_s6 + $0x80] ss:$16 sps:$4 sm:$0xff]  }
 0x104   :  { %1933 = vmatprep.subr.bf16.mxu0 %v4717_v47  ;;  %v4765_v47 = vld [vmem:[%s6629_s6 + $0xa4] ss:$16 sps:$4 sm:$0xff]   ;;  %2217 = vmatpush1.bf16.msra.mxu1 %v4760_v46  ;;  %v4781_v46 = vld [vmem:[%s6629_s6 + $0x68] ss:$16 sps:$4 sm:$0xff]  }
 0x105   :  { %2218 = vmatprep.subr.bf16.mxu1 %v4765_v47  ;;  %v4786_v47 = vld [vmem:[%s6629_s6 + $0x8c] ss:$16 sps:$4 sm:$0xff]  }
 0x107   :  { %1934 = vmatpush1.bf16.msra.mxu0 %v4715_v48  ;;  %v4763_v48 = vld [vmem:[%s6629_s6 + $0xa0] ss:$16 sps:$4 sm:$0xff]  }
 0x108   :  { %1935 = vmatprep.subr.bf16.mxu0 %v4720_v49  ;;  %v4768_v49 = vld [vmem:[%s6629_s6 + $0xc4] ss:$16 sps:$4 sm:$0xff]   ;;  %2219 = vmatpush1.bf16.msra.mxu1 %v4763_v48  ;;  %v4784_v48 = vld [vmem:[%s6629_s6 + $0x88] ss:$16 sps:$4 sm:$0xff]  }
 0x109   :  { %2220 = vmatprep.subr.bf16.mxu1 %v4768_v49  ;;  %v4789_v49 = vld [vmem:[%s6629_s6 + $0xac] ss:$16 sps:$4 sm:$0xff]  }
 0x10b   :  { %1936 = vmatpush1.bf16.msra.mxu0 %v4718_v50  ;;  %v4766_v50 = vld [vmem:[%s6629_s6 + $0xc0] ss:$16 sps:$4 sm:$0xff]  }
 0x10c   :  { %1946 = vmatprep.subr.bf16.mxu0 %v4723_v51  ;;  %v4771_v51 = vld [vmem:[%s6629_s6 + $0xe4] ss:$16 sps:$4 sm:$0xff]   ;;  %2221 = vmatpush1.bf16.msra.mxu1 %v4766_v50  ;;  %v4787_v50 = vld [vmem:[%s6629_s6 + $0xa8] ss:$16 sps:$4 sm:$0xff]  }
 0x10d   :  { %2222 = vmatprep.subr.bf16.mxu1 %v4771_v51  ;;  %v4792_v51 = vld [vmem:[%s6629_s6 + $0xcc] ss:$16 sps:$4 sm:$0xff]  }
 0x110   :  { %2223 = vmatpush1.bf16.msra.mxu1 %v4769_v52  ;;  %v4790_v52 = vld [vmem:[%s6629_s6 + $0xc8] ss:$16 sps:$4 sm:$0xff]  }
 0x111   :  { %2249 = vmatprep.subr.bf16.mxu1 %v4774_v53  ;;  %v4795_v53 = vld [vmem:[%s6629_s6 + $0xec] ss:$16 sps:$4 sm:$0xff]  }
 0x1a1   :  { %v1411_v1 = vpop.f32.mrb[0].mxu0  ;;  %v1575_v2 = vpop.f32.mrb[0].mxu1 }
 0x1a2   :  { %v4326_v3 = vadd.f32 %v1411_v1, %v253_v62  ;;  %v1413_v4 = vpop.f32.mrb[1].mxu0  ;;  %v1577_v5 = vpop.f32.mrb[1].mxu1  ;;  %v4328_v36 = vadd.f32 %v1575_v2, %v261_v33  ;;  %v4813_v62 = vld [vmem:[%s6631_s8 + $0x7c] ss:$28 sps:$4 sm:$0xff]   ;;  %v4817_v1 = vld [vmem:[%s6631_s8 + $0xb0] ss:$28 sps:$4 sm:$0xff]  }
 0x1a3   :  { %v4327_v6 = vadd.f32 %v1413_v4, %v257_v63  ;;  %v4329_v7 = vadd.f32 %v1577_v5, %v265_v0  ;;  %v1415_v8 = vpop.f32.mrb[2].mxu0  ;;  %v1579_v9 = vpop.f32.mrb[2].mxu1  ;;  %v4811_v63 = vld [vmem:[%s6631_s8 + $0x78] ss:$28 sps:$4 sm:$0xff]   ;;  %v4825_v2 = vld [vmem:[%s6631_s8 + $0xec] ss:$28 sps:$4 sm:$0xff]  }
 0x1a4   :  { %v1582_v10 = vmax.f32 %v4326_v3, 0.0  ;;  %v1416_v11 = vpop.f32.mrb[3].mxu0  ;;  %v1580_v12 = vpop.f32.mrb[3].mxu1  ;;  %v1584_v39 = vmax.f32 %v4328_v36, 0.0  ;;  %v4819_v0 = vld [vmem:[%s6631_s8 + $0xb4] ss:$28 sps:$4 sm:$0xff]  }
 0x1a5   :  { %v1583_v13 = vmax.f32 %v4327_v6, 0.0  ;;  %v1585_v14 = vmax.f32 %v4329_v7, 0.0  ;;  %v4823_v3 = vld [vmem:[%s6631_s8 + $0xe8] ss:$28 sps:$4 sm:$0xff]   ;;  %v4829_v5 = vld [vmem:[%s6631_s8 + $0x120] ss:$28 sps:$4 sm:$0xff]  }
 0x1a6   :  { %v1586_v18 = vpack.c.bf16 %v1582_v10, %v1582_v10  ;;  %v1588_v40 = vpack.c.bf16 %v1584_v39, %v1584_v39  ;;  %v4831_v4 = vld [vmem:[%s6631_s8 + $0x124] ss:$28 sps:$4 sm:$0xff]   ;;  %v4837_v6 = vld [vmem:[%s6631_s8 + $0x15c] ss:$28 sps:$4 sm:$0xff]   ;;  %v4843_v8 = vld [vmem:[%s6631_s8 + $0x194] ss:$28 sps:$4 sm:$0xff]  }
 0x1a7   :  { %v1587_v15 = vpack.c.bf16 %v1583_v13, %v1583_v13  ;;  %v1589_v20 = vpack.c.bf16 %v1585_v14, %v1585_v14  ;;  %v4835_v7 = vld [vmem:[%s6631_s8 + $0x158] ss:$28 sps:$4 sm:$0xff]   ;;  %v4841_v9 = vld [vmem:[%s6631_s8 + $0x190] ss:$28 sps:$4 sm:$0xff]   ;;  %v4847_v11 = vld [vmem:[%s6631_s8 + $0x1c8] ss:$28 sps:$4 sm:$0xff]  }
 0x1a8   :  { %v4849_v10 = vld [vmem:[%s6631_s8 + $0x1cc] ss:$28 sps:$4 sm:$0xff]   ;;  %v4855_v12 = vld [vmem:[%s6631_s8 + $0x204] ss:$28 sps:$4 sm:$0xff]   ;;  %v4861_v14 = vld [vmem:[%s6631_s8 + $0x23c] ss:$28 sps:$4 sm:$0xff]  }
 0x1a9   :  { %1937 = vmatprep.mubr.bf16.mxu0 %v1587_v15  ;;  %v4853_v13 = vld [vmem:[%s6631_s8 + $0x200] ss:$28 sps:$4 sm:$0xff]   ;;  %v4859_v15 = vld [vmem:[%s6631_s8 + $0x238] ss:$28 sps:$4 sm:$0xff]  }
 0x1aa   :  { %1938 = vmatmul.mubr.bf16.vlgmr.msra.gmra.mrb[4].mxu0 %v1586_v18  ;;  %v4865_v18 = vld [vmem:[%s6631_s8 + $0x270] ss:$28 sps:$4 sm:$0xff]   ;;  %v4772_v39 = vld [vmem:[%s6629_s6 + $0x8] ss:$16 sps:$4 sm:$0xff]  }
 0x1ab   :  { %1947 = vmatpush1.bf16.msra.mxu0 %v4721_v16  ;;  %4084 = vmatprep.mubr.msk.bf16.mxu0 %vm1250_vm0, %v1589_v20  ;;  %v4867_v16 = vld [vmem:[%s6631_s8 + $0x274] ss:$28 sps:$4 sm:$0xff]   ;;  %v4871_v20 = vld [vmem:[%s6631_s8 + $0x2a8] ss:$28 sps:$4 sm:$0xff]  }
 0x1ac   :  { %1948 = vmatprep.subr.bf16.mxu0 %v4726_v19  ;;  %v4873_v19 = vld [vmem:[%s6631_s8 + $0x2ac] ss:$28 sps:$4 sm:$0xff]  }
 0x1af   :  { %1949 = vmatpush1.bf16.msra.mxu0 %v4724_v21  ;;  %v4879_v21 = vld [vmem:[%s6631_s8 + $0x2e4] ss:$28 sps:$4 sm:$0xff]  }
 0x1b0   :  { %1950 = vmatprep.subr.bf16.mxu0 %v4729_v22  ;;  %v4877_v22 = vld [vmem:[%s6631_s8 + $0x2e0] ss:$28 sps:$4 sm:$0xff]  }
 0x1b3   :  { %1951 = vmatpush1.bf16.msra.mxu0 %v4727_v23  ;;  %v1640_v23 = vld [vmem:[%s6632_s5] sm:$0x3] }
 0x1b4   :  { %1952 = vmatprep.subr.bf16.mxu0 %v4732_v24  ;;  %v1645_v24 = vrot.slane %v1640_v23, %v5851_v58 }
 0x1b7   :  { %1953 = vmatpush1.bf16.msra.mxu0 %v4730_v25  ;;  %v1649_v25 = vrot.slane %v1640_v23, %v5857_v60  ;;  %v4874_v23 = vld [vmem:[%s6631_s8 + $0x2d8] ss:$28 sps:$4 sm:$0xff]  }
 0x1b8   :  { %1954 = vmatprep.subr.bf16.mxu0 %v4735_v26 }
 0x1bb   :  { %1955 = vmatpush1.bf16.msra.mxu0 %v4733_v27 }
 0x1bc   :  { %1956 = vmatprep.subr.bf16.mxu0 %v4738_v28 }
 0x1bf   :  { %1957 = vmatpush1.bf16.msra.mxu0 %v4736_v29 }
 0x1c0   :  { %1958 = vmatprep.subr.bf16.mxu0 %v4741_v31 }
 0x1c3   :  { %1959 = vmatpush1.bf16.msra.mxu0 %v4739_v32 }
 0x1c4   :  { %1960 = vmatprep.subr.bf16.mxu0 %v4744_v34 }
 0x1c7   :  { %1961 = vmatpush1.bf16.msra.mxu0 %v4742_v35  ;;  %v1987_v35 = vld [vmem:[%s6634_s1] sm:$0xff] }
 0x1c8   :  { %1962 = vmatprep.subr.bf16.mxu0 %v4747_v37 }
 0x1cb   :  { %1963 = vmatpush1.bf16.msra.mxu0 %v4745_v38 }
 0x1cc   :  { %3520 = vmatprep.subr.bf16.mxu0 %v4801_v55  ;;  %v4798_v55 = vld [vmem:[%s6631_s8 + $0x4] ss:$28 sps:$4 sm:$0xff]  }
 0x1ce   :  { %1979 = vmatmul.mubr.bf16.vlgmr.msra.gmra.mrb[4].mxu0 %v1588_v40 }
 0x1cf   :  { %3521 = vmatpush1.bf16.msra.mxu0 %v4799_v54  ;;  %v4793_v54 = vld [vmem:[%s6629_s6 + $0xe8] ss:$16 sps:$4 sm:$0xff]  }
 0x1d0   :  { %3522 = vmatprep.subr.bf16.mxu0 %v4807_v59  ;;  %v4804_v59 = vld [vmem:[%s6631_s8 + $0x3c] ss:$28 sps:$4 sm:$0xff]  }
 0x1d3   :  { %3523 = vmatpush1.bf16.msra.mxu0 %v4805_v56  ;;  %v4796_v56 = vld [vmem:[%s6631_s8] ss:$28 sps:$4 sm:$0xff]  }
 0x1d4   :  { %3524 = vmatprep.subr.bf16.mxu0 %v4813_v62  ;;  %v4802_v62 = vld [vmem:[%s6631_s8 + $0x38] ss:$28 sps:$4 sm:$0xff]  }
 0x1d7   :  { %3525 = vmatpush1.bf16.msra.mxu0 %v4811_v63  ;;  %v4810_v63 = vld [vmem:[%s6631_s8 + $0x74] ss:$28 sps:$4 sm:$0xff]  }
 0x1d8   :  { %3526 = vmatprep.subr.bf16.mxu0 %v4819_v0  ;;  %v4808_v0 = vld [vmem:[%s6631_s8 + $0x70] ss:$28 sps:$4 sm:$0xff]  }
 0x1db   :  { %3527 = vmatpush1.bf16.msra.mxu0 %v4817_v1  ;;  %v4816_v1 = vld [vmem:[%s6631_s8 + $0xac] ss:$28 sps:$4 sm:$0xff]  }
 0x1dc   :  { %3528 = vmatprep.subr.bf16.mxu0 %v4825_v2  ;;  %v4814_v2 = vld [vmem:[%s6631_s8 + $0xa8] ss:$28 sps:$4 sm:$0xff]  }
 0x1df   :  { %3529 = vmatpush1.bf16.msra.mxu0 %v4823_v3  ;;  %v4822_v3 = vld [vmem:[%s6631_s8 + $0xe4] ss:$28 sps:$4 sm:$0xff]  }
 0x1e0   :  { %3530 = vmatprep.subr.bf16.mxu0 %v4831_v4  ;;  %v4820_v4 = vld [vmem:[%s6631_s8 + $0xe0] ss:$28 sps:$4 sm:$0xff]  }
 0x1e3   :  { %3531 = vmatpush1.bf16.msra.mxu0 %v4829_v5  ;;  %v4828_v5 = vld [vmem:[%s6631_s8 + $0x11c] ss:$28 sps:$4 sm:$0xff]  }
 0x1e4   :  { %3532 = vmatprep.subr.bf16.mxu0 %v4837_v6  ;;  %v4826_v6 = vld [vmem:[%s6631_s8 + $0x118] ss:$28 sps:$4 sm:$0xff]  }
 0x1e7   :  { %3533 = vmatpush1.bf16.msra.mxu0 %v4835_v7  ;;  %v4834_v7 = vld [vmem:[%s6631_s8 + $0x154] ss:$28 sps:$4 sm:$0xff]  }
 0x1e8   :  { %3534 = vmatprep.subr.bf16.mxu0 %v4843_v8  ;;  %v4832_v8 = vld [vmem:[%s6631_s8 + $0x150] ss:$28 sps:$4 sm:$0xff]  }
 0x1eb   :  { %3535 = vmatpush1.bf16.msra.mxu0 %v4841_v9  ;;  %v4840_v9 = vld [vmem:[%s6631_s8 + $0x18c] ss:$28 sps:$4 sm:$0xff]  }
 0x1ec   :  { %3536 = vmatprep.subr.bf16.mxu0 %v4849_v10  ;;  %v4838_v10 = vld [vmem:[%s6631_s8 + $0x188] ss:$28 sps:$4 sm:$0xff]  }
 0x1ef   :  { %3537 = vmatpush1.bf16.msra.mxu0 %v4847_v11  ;;  %v4846_v11 = vld [vmem:[%s6631_s8 + $0x1c4] ss:$28 sps:$4 sm:$0xff]  }
 0x1f0   :  { %3538 = vmatprep.subr.bf16.mxu0 %v4855_v12  ;;  %v4844_v12 = vld [vmem:[%s6631_s8 + $0x1c0] ss:$28 sps:$4 sm:$0xff]  }
 0x1f3   :  { %3539 = vmatpush1.bf16.msra.mxu0 %v4853_v13  ;;  %v4852_v13 = vld [vmem:[%s6631_s8 + $0x1fc] ss:$28 sps:$4 sm:$0xff]  }
 0x1f4   :  { %3540 = vmatprep.subr.bf16.mxu0 %v4861_v14  ;;  %v4850_v14 = vld [vmem:[%s6631_s8 + $0x1f8] ss:$28 sps:$4 sm:$0xff]  }
 0x1f7   :  { %3541 = vmatpush1.bf16.msra.mxu0 %v4859_v15  ;;  %v4858_v15 = vld [vmem:[%s6631_s8 + $0x234] ss:$28 sps:$4 sm:$0xff]  }
 0x1f8   :  { %3542 = vmatprep.subr.bf16.mxu0 %v4867_v16  ;;  %v4856_v16 = vld [vmem:[%s6631_s8 + $0x230] ss:$28 sps:$4 sm:$0xff]  }
 0x1fb   :  { %3543 = vmatpush1.bf16.msra.mxu0 %v4865_v18  ;;  %v4864_v18 = vld [vmem:[%s6631_s8 + $0x26c] ss:$28 sps:$4 sm:$0xff]  }
 0x1fc   :  { %3544 = vmatprep.subr.bf16.mxu0 %v4873_v19  ;;  %v4862_v19 = vld [vmem:[%s6631_s8 + $0x268] ss:$28 sps:$4 sm:$0xff]  }
 0x1ff   :  { %3545 = vmatpush1.bf16.msra.mxu0 %v4871_v20  ;;  %v4870_v20 = vld [vmem:[%s6631_s8 + $0x2a4] ss:$28 sps:$4 sm:$0xff]  }
 0x200   :  { %3546 = vmatprep.subr.bf16.mxu0 %v4879_v21  ;;  %v4868_v21 = vld [vmem:[%s6631_s8 + $0x2a0] ss:$28 sps:$4 sm:$0xff]  }
 0x203   :  { %3547 = vmatpush1.bf16.msra.mxu0 %v4877_v22  ;;  %v4876_v22 = vld [vmem:[%s6631_s8 + $0x2dc] ss:$28 sps:$4 sm:$0xff]  }
 0x2a1   :  { %v1980_v26 = vpop.f32.mrb[4].mxu0 }
 0x2a2   :  { %v4330_v27 = vadd.f32 %v1980_v26, %v1645_v24  ;;  %v1982_v28 = vpop.f32.mrb[5].mxu0  ;;  %v4882_v24 = vld [vmem:[%s6631_s8 + $0x314] ss:$28 sps:$4 sm:$0xff]  }
 0x2a3   :  { %v4331_v29 = vadd.f32 %v1982_v28, %v1649_v25  ;;  %v1984_v31 = vpop.f32.mrb[6].mxu0  ;;  %v4885_v25 = vld [vmem:[%s6631_s8 + $0x31c] ss:$28 sps:$4 sm:$0xff]   ;;  %v4888_v28 = vld [vmem:[%s6631_s8 + $0x34c] ss:$28 sps:$4 sm:$0xff]  }
 0x2a4   :  { %3826 = vst [vmem:[%s6633_s11] sm:$0xff] %v4330_v27  ;;  %v1985_v32 = vpop.f32.mrb[7].mxu0  ;;  %v4883_v26 = vld [vmem:[%s6631_s8 + $0x318] ss:$28 sps:$4 sm:$0xff]   ;;  %3548 = vmatprep.subr.bf16.mxu0 %v4885_v25  ;;  %v4889_v31 = vld [vmem:[%s6631_s8 + $0x350] ss:$28 sps:$4 sm:$0xff]  }
 0x2a5   :  { %v1988_v33 = vmul.f32 0.5, %v4331_v29  ;;  %3827 = vst [vmem:[%s6633_s11 + $0x8] sm:$0xff] %v4331_v29  ;;  %3549 = vmatpush1.bf16.msra.mxu0 %v4883_v26  ;;  %v4891_v29 = vld [vmem:[%s6631_s8 + $0x354] ss:$28 sps:$4 sm:$0xff]   ;;  %v4886_v32 = vld [vmem:[%s6631_s8 + $0x348] ss:$28 sps:$4 sm:$0xff]  }
 0x2a6   :  { %3550 = vmatprep.subr.bf16.mxu0 %v4891_v29 }
 0x2a7   :  { %v1989_v34 = vmul.f32 1.442695, %v1988_v33  ;;  %v4894_v33 = vld [vmem:[%s6631_s8 + $0x384] ss:$28 sps:$4 sm:$0xff]  }
 0x2a9   :  { %5046 = vpow2.f32 %v1989_v34  ;;  %3551 = vmatpush1.bf16.msra.mxu0 %v4889_v31  ;;  %v4897_v34 = vld [vmem:[%s6631_s8 + $0x38c] ss:$28 sps:$4 sm:$0xff]  }
 0x2aa   :  { %3561 = vmatprep.subr.bf16.mxu0 %v4897_v34 }
 0x2b3   :  { %v5047_v36 = vpop.eup %5046 }
 0x2b4   :  { %v1991_v37 = vmul.f32 %v5047_v36, %v1987_v35  ;;  %v6221_v35 = vld [vmem:[%s6635_s7] sm:$0xf] }
 0x2b5   :  { %v2031_v36 = vrot.slane %v6221_v35, %v5851_v58 }
 0x2b6   :  { %v1992_v38 = vadd.f32 %v4330_v27, %v1991_v37  ;;  %v4880_v27 = vld [vmem:[%s6631_s8 + $0x310] ss:$28 sps:$4 sm:$0xff]   ;;  %v2035_v37 = vrot.slane %v6221_v35, %v5857_v60 }
 0x2b8   :  { %v1993_v40 = vpack.c.bf16 %v1992_v38, %v1992_v38 }
 0x2ba   :  { %2241 = vmatmul.mubr.bf16.vlgmr.msra.gmra.mrb[4].mxu1 %v1993_v40 }
 0x2bb   :  { %2250 = vmatpush1.bf16.msra.mxu1 %v4772_v39  ;;  %2281 = vmatprep.mubr.bf16.mxu1 %v5062_v17 }
 0x2bc   :  { %2251 = vmatprep.subr.bf16.mxu1 %v4777_v41 }
 0x2bf   :  { %2252 = vmatpush1.bf16.msra.mxu1 %v4775_v42 }
 0x2c0   :  { %2253 = vmatprep.subr.bf16.mxu1 %v4780_v43 }
 0x2c3   :  { %2254 = vmatpush1.bf16.msra.mxu1 %v4778_v44 }
 0x2c4   :  { %2255 = vmatprep.subr.bf16.mxu1 %v4783_v45 }
 0x2c7   :  { %2256 = vmatpush1.bf16.msra.mxu1 %v4781_v46 }
 0x2c8   :  { %2257 = vmatprep.subr.bf16.mxu1 %v4786_v47  ;;  %v4892_v47 = vld [vmem:[%s6631_s8 + $0x380] ss:$28 sps:$4 sm:$0xff]  }
 0x2cb   :  { %2258 = vmatpush1.bf16.msra.mxu1 %v4784_v48  ;;  %v4895_v48 = vld [vmem:[%s6631_s8 + $0x388] ss:$28 sps:$4 sm:$0xff]  }
 0x2cc   :  { %2259 = vmatprep.subr.bf16.mxu1 %v4789_v49 }
 0x2cf   :  { %2260 = vmatpush1.bf16.msra.mxu1 %v4787_v50  ;;  %v4900_v50 = vld [vmem:[%s6631_s8 + $0x3bc] ss:$28 sps:$4 sm:$0xff]  }
 0x2d0   :  { %2261 = vmatprep.subr.bf16.mxu1 %v4792_v51  ;;  %v4903_v51 = vld [vmem:[%s6631_s8 + $0x3c4] ss:$28 sps:$4 sm:$0xff]  }
 0x2d3   :  { %2262 = vmatpush1.bf16.msra.mxu1 %v4790_v52  ;;  %v4898_v52 = vld [vmem:[%s6631_s8 + $0x3b8] ss:$28 sps:$4 sm:$0xff]  }
 0x2d4   :  { %2263 = vmatprep.subr.bf16.mxu1 %v4795_v53  ;;  %v4901_v53 = vld [vmem:[%s6631_s8 + $0x3c0] ss:$28 sps:$4 sm:$0xff]  }
 0x2d7   :  { %2264 = vmatpush1.bf16.msra.mxu1 %v4793_v54  ;;  %v4906_v54 = vld [vmem:[%s6631_s8 + $0x3f4] ss:$28 sps:$4 sm:$0xff]  }
 0x2d8   :  { %3438 = vmatprep.subr.bf16.mxu1 %v4798_v55  ;;  %v4909_v55 = vld [vmem:[%s6631_s8 + $0x3fc] ss:$28 sps:$4 sm:$0xff]  }
 0x2da   :  { %2282 = vmatmul.mubr.bf16.vlgmr.msra.gmra.mrb[8].mxu1 %v1993_v40 }
 0x2db   :  { %3439 = vmatpush1.bf16.msra.mxu1 %v4796_v56  ;;  %v4904_v56 = vld [vmem:[%s6631_s8 + $0x3f0] ss:$28 sps:$4 sm:$0xff]  }
 0x2dc   :  { %3440 = vmatprep.subr.bf16.mxu1 %v4804_v59  ;;  %v4907_v59 = vld [vmem:[%s6631_s8 + $0x3f8] ss:$28 sps:$4 sm:$0xff]  }
 0x2df   :  { %3441 = vmatpush1.bf16.msra.mxu1 %v4802_v62  ;;  %v4912_v62 = vld [vmem:[%s6631_s8 + $0x42c] ss:$28 sps:$4 sm:$0xff]  }
 0x2e0   :  { %3442 = vmatprep.subr.bf16.mxu1 %v4810_v63  ;;  %v4915_v63 = vld [vmem:[%s6631_s8 + $0x434] ss:$28 sps:$4 sm:$0xff]  }
 0x2e3   :  { %3443 = vmatpush1.bf16.msra.mxu1 %v4808_v0  ;;  %v4910_v0 = vld [vmem:[%s6631_s8 + $0x428] ss:$28 sps:$4 sm:$0xff]  }
 0x2e4   :  { %3444 = vmatprep.subr.bf16.mxu1 %v4816_v1  ;;  %v4913_v1 = vld [vmem:[%s6631_s8 + $0x430] ss:$28 sps:$4 sm:$0xff]  }
 0x2e7   :  { %3445 = vmatpush1.bf16.msra.mxu1 %v4814_v2  ;;  %v4918_v2 = vld [vmem:[%s6631_s8 + $0x464] ss:$28 sps:$4 sm:$0xff]  }
 0x2e8   :  { %3446 = vmatprep.subr.bf16.mxu1 %v4822_v3  ;;  %v4921_v3 = vld [vmem:[%s6631_s8 + $0x46c] ss:$28 sps:$4 sm:$0xff]  }
 0x2eb   :  { %3447 = vmatpush1.bf16.msra.mxu1 %v4820_v4  ;;  %v4916_v4 = vld [vmem:[%s6631_s8 + $0x460] ss:$28 sps:$4 sm:$0xff]  }
 0x2ec   :  { %3448 = vmatprep.subr.bf16.mxu1 %v4828_v5  ;;  %v4919_v5 = vld [vmem:[%s6631_s8 + $0x468] ss:$28 sps:$4 sm:$0xff]  }
 0x2ef   :  { %3449 = vmatpush1.bf16.msra.mxu1 %v4826_v6  ;;  %v4924_v6 = vld [vmem:[%s6631_s8 + $0x49c] ss:$28 sps:$4 sm:$0xff]  }
 0x2f0   :  { %3450 = vmatprep.subr.bf16.mxu1 %v4834_v7  ;;  %v4927_v7 = vld [vmem:[%s6631_s8 + $0x4a4] ss:$28 sps:$4 sm:$0xff]  }
 0x2f3   :  { %3451 = vmatpush1.bf16.msra.mxu1 %v4832_v8  ;;  %v4922_v8 = vld [vmem:[%s6631_s8 + $0x498] ss:$28 sps:$4 sm:$0xff]  }
 0x2f4   :  { %3452 = vmatprep.subr.bf16.mxu1 %v4840_v9  ;;  %v4925_v9 = vld [vmem:[%s6631_s8 + $0x4a0] ss:$28 sps:$4 sm:$0xff]  }
 0x2f7   :  { %3453 = vmatpush1.bf16.msra.mxu1 %v4838_v10  ;;  %v4930_v10 = vld [vmem:[%s6631_s8 + $0x4d4] ss:$28 sps:$4 sm:$0xff]  }
 0x2f8   :  { %3454 = vmatprep.subr.bf16.mxu1 %v4846_v11  ;;  %v4933_v11 = vld [vmem:[%s6631_s8 + $0x4dc] ss:$28 sps:$4 sm:$0xff]  }
 0x2fb   :  { %3455 = vmatpush1.bf16.msra.mxu1 %v4844_v12  ;;  %v2043_v12 = vrot.slane %v6221_v35, %v5860_v61 }
 0x2fc   :  { %3456 = vmatprep.subr.bf16.mxu1 %v4852_v13  ;;  %v4928_v13 = vld [vmem:[%s6631_s8 + $0x4d0] ss:$28 sps:$4 sm:$0xff]  }
 0x2ff   :  { %3457 = vmatpush1.bf16.msra.mxu1 %v4850_v14  ;;  %v4931_v14 = vld [vmem:[%s6631_s8 + $0x4d8] ss:$28 sps:$4 sm:$0xff]  }
 0x300   :  { %3458 = vmatprep.subr.bf16.mxu1 %v4858_v15  ;;  %v2039_v15 = vrot.slane %v6221_v35, %v5900_v30  ;;  %v4948_v35 = vld [vmem:[%s6631_s8 + $0x14] ss:$28 sps:$4 sm:$0xff]  }
 0x303   :  { %3459 = vmatpush1.bf16.msra.mxu1 %v4856_v16  ;;  %v4936_v16 = vld [vmem:[%s6631_s8 + $0x50c] ss:$28 sps:$4 sm:$0xff]  }
 0x304   :  { %3460 = vmatprep.subr.bf16.mxu1 %v4864_v18  ;;  %v4939_v18 = vld [vmem:[%s6631_s8 + $0x514] ss:$28 sps:$4 sm:$0xff]  }
 0x307   :  { %3461 = vmatpush1.bf16.msra.mxu1 %v4862_v19 }
 0x308   :  { %3462 = vmatprep.subr.bf16.mxu1 %v4870_v20 }
 0x30b   :  { %3463 = vmatpush1.bf16.msra.mxu1 %v4868_v21 }
 0x30c   :  { %3464 = vmatprep.subr.bf16.mxu1 %v4876_v22 }
 0x30f   :  { %3465 = vmatpush1.bf16.msra.mxu1 %v4874_v23  ;;  %v4934_v23 = vld [vmem:[%s6631_s8 + $0x508] ss:$28 sps:$4 sm:$0xff]  }
 0x310   :  { %3466 = vmatprep.subr.bf16.mxu1 %v4882_v24  ;;  %v4937_v24 = vld [vmem:[%s6631_s8 + $0x510] ss:$28 sps:$4 sm:$0xff]  }
 0x313   :  { %3467 = vmatpush1.bf16.msra.mxu1 %v4880_v27  ;;  %v4942_v27 = vld [vmem:[%s6631_s8 + $0x544] ss:$28 sps:$4 sm:$0xff]  }
 0x314   :  { %3468 = vmatprep.subr.bf16.mxu1 %v4888_v28  ;;  %v4945_v28 = vld [vmem:[%s6631_s8 + $0x54c] ss:$28 sps:$4 sm:$0xff]  }
 0x317   :  { %3469 = vmatpush1.bf16.msra.mxu1 %v4886_v32  ;;  %v4940_v32 = vld [vmem:[%s6631_s8 + $0x540] ss:$28 sps:$4 sm:$0xff]  }
 0x318   :  { %3479 = vmatprep.subr.bf16.mxu1 %v4894_v33  ;;  %v4943_v33 = vld [vmem:[%s6631_s8 + $0x548] ss:$28 sps:$4 sm:$0xff]  }
 0x38d   :  { %v2242_v38 = vpop.f32.mrb[4].mxu1 }
 0x38e   :  { %v2243_v39 = vadd.f32 %v2242_v38, %v2031_v36  ;;  %v2244_v40 = vpop.f32.mrb[5].mxu1  ;;  %v4949_v36 = vld [vmem:[%s6631_s8 + $0x1d8] ss:$28 sps:$4 sm:$0xff]  }
 0x38f   :  { %v2245_v41 = vadd.f32 %v2244_v40, %v2035_v37  ;;  %v2246_v42 = vpop.f32.mrb[6].mxu1  ;;  %v4946_v37 = vld [vmem:[%s6631_s8 + $0x10] ss:$28 sps:$4 sm:$0xff]  }
 0x390   :  { %v2290_v43 = vmax.f32 %v2243_v39, 0.0  ;;  %v2247_v44 = vpop.f32.mrb[7].mxu1  ;;  %v4950_v39 = vld [vmem:[%s6631_s8 + $0x18] ss:$28 sps:$4 sm:$0xff]   ;;  %v4953_v40 = vld [vmem:[%s6631_s8 + $0x4c] ss:$28 sps:$4 sm:$0xff]  }
 0x391   :  { %v2291_v45 = vmax.f32 %v2245_v41, 0.0  ;;  %v4954_v41 = vld [vmem:[%s6631_s8 + $0x210] ss:$28 sps:$4 sm:$0xff]   ;;  %v4951_v42 = vld [vmem:[%s6631_s8 + $0x48] ss:$28 sps:$4 sm:$0xff]  }
 0x392   :  { %v6235_v49 = vpack.c.bf16 %v2290_v43, %v2290_v43  ;;  %v4955_v43 = vld [vmem:[%s6631_s8 + $0x50] ss:$28 sps:$4 sm:$0xff]   ;;  %v4958_v44 = vld [vmem:[%s6631_s8 + $0x84] ss:$28 sps:$4 sm:$0xff]  }
 0x393   :  { %v6227_v46 = vpack.c.bf16 %v2291_v45, %v2291_v45  ;;  %v4959_v45 = vld [vmem:[%s6631_s8 + $0x248] ss:$28 sps:$4 sm:$0xff]  }
 0x395   :  { %3470 = vmatprep.mubr.bf16.mxu1 %v6227_v46  ;;  %3552 = vmatprep.mubr.bf16.mxu0 %v6227_v46 }
 0x396   :  { %3471 = vmatmul.mubr.bf16.vlgmr.msra.gmra.mrb[12].mxu1 %v6235_v49  ;;  %3553 = vmatmul.mubr.bf16.vlgmr.msra.gmra.mrb[8].mxu0 %v6235_v49 }
 0x397   :  { %3480 = vmatpush1.bf16.msra.mxu1 %v4892_v47  ;;  %3562 = vmatpush1.bf16.msra.mxu0 %v4895_v48  ;;  %v4956_v47 = vld [vmem:[%s6631_s8 + $0x80] ss:$28 sps:$4 sm:$0xff]  }
 0x398   :  { %3481 = vmatprep.subr.bf16.mxu1 %v4900_v50  ;;  %3563 = vmatprep.subr.bf16.mxu0 %v4903_v51  ;;  %v4963_v48 = vld [vmem:[%s6631_s8 + $0xbc] ss:$28 sps:$4 sm:$0xff]  }
 0x399   :  { %v4964_v50 = vld [vmem:[%s6631_s8 + $0x280] ss:$28 sps:$4 sm:$0xff]   ;;  %v4961_v51 = vld [vmem:[%s6631_s8 + $0xb8] ss:$28 sps:$4 sm:$0xff]  }
 0x39b   :  { %3482 = vmatpush1.bf16.msra.mxu1 %v4898_v52  ;;  %3564 = vmatpush1.bf16.msra.mxu0 %v4901_v53  ;;  %v4965_v52 = vld [vmem:[%s6631_s8 + $0xc0] ss:$28 sps:$4 sm:$0xff]   ;;  %v4968_v53 = vld [vmem:[%s6631_s8 + $0xf4] ss:$28 sps:$4 sm:$0xff]  }
 0x39c   :  { %3483 = vmatprep.subr.bf16.mxu1 %v4906_v54  ;;  %3565 = vmatprep.subr.bf16.mxu0 %v4909_v55  ;;  %v4969_v54 = vld [vmem:[%s6631_s8 + $0x2b8] ss:$28 sps:$4 sm:$0xff]   ;;  %v4966_v55 = vld [vmem:[%s6631_s8 + $0xf0] ss:$28 sps:$4 sm:$0xff]  }
 0x39f   :  { %3484 = vmatpush1.bf16.msra.mxu1 %v4904_v56  ;;  %3566 = vmatpush1.bf16.msra.mxu0 %v4907_v59  ;;  %v4970_v56 = vld [vmem:[%s6631_s8 + $0xf8] ss:$28 sps:$4 sm:$0xff]   ;;  %v4973_v59 = vld [vmem:[%s6631_s8 + $0x12c] ss:$28 sps:$4 sm:$0xff]  }
 0x3a0   :  { %3485 = vmatprep.subr.bf16.mxu1 %v4912_v62  ;;  %3567 = vmatprep.subr.bf16.mxu0 %v4915_v63  ;;  %v4974_v62 = vld [vmem:[%s6631_s8 + $0x2f0] ss:$28 sps:$4 sm:$0xff]   ;;  %v4971_v63 = vld [vmem:[%s6631_s8 + $0x128] ss:$28 sps:$4 sm:$0xff]  }
 0x3a3   :  { %3486 = vmatpush1.bf16.msra.mxu1 %v4910_v0  ;;  %3568 = vmatpush1.bf16.msra.mxu0 %v4913_v1  ;;  %v4975_v0 = vld [vmem:[%s6631_s8 + $0x130] ss:$28 sps:$4 sm:$0xff]   ;;  %v4978_v1 = vld [vmem:[%s6631_s8 + $0x164] ss:$28 sps:$4 sm:$0xff]  }
 0x3a4   :  { %3487 = vmatprep.subr.bf16.mxu1 %v4918_v2  ;;  %3569 = vmatprep.subr.bf16.mxu0 %v4921_v3  ;;  %v4979_v2 = vld [vmem:[%s6631_s8 + $0x328] ss:$28 sps:$4 sm:$0xff]   ;;  %v4976_v3 = vld [vmem:[%s6631_s8 + $0x160] ss:$28 sps:$4 sm:$0xff]  }
 0x3a7   :  { %3488 = vmatpush1.bf16.msra.mxu1 %v4916_v4  ;;  %3570 = vmatpush1.bf16.msra.mxu0 %v4919_v5  ;;  %v4980_v4 = vld [vmem:[%s6631_s8 + $0x168] ss:$28 sps:$4 sm:$0xff]   ;;  %v4983_v5 = vld [vmem:[%s6631_s8 + $0x19c] ss:$28 sps:$4 sm:$0xff]  }
 0x3a8   :  { %3489 = vmatprep.subr.bf16.mxu1 %v4924_v6  ;;  %3571 = vmatprep.subr.bf16.mxu0 %v4927_v7  ;;  %v4984_v6 = vld [vmem:[%s6631_s8 + $0x360] ss:$28 sps:$4 sm:$0xff]   ;;  %v4981_v7 = vld [vmem:[%s6631_s8 + $0x198] ss:$28 sps:$4 sm:$0xff]  }
 0x3ab   :  { %3490 = vmatpush1.bf16.msra.mxu1 %v4922_v8  ;;  %3572 = vmatpush1.bf16.msra.mxu0 %v4925_v9  ;;  %v4985_v8 = vld [vmem:[%s6631_s8 + $0x1a0] ss:$28 sps:$4 sm:$0xff]   ;;  %v4988_v9 = vld [vmem:[%s6631_s8 + $0x1d4] ss:$28 sps:$4 sm:$0xff]  }
 0x3ac   :  { %3491 = vmatprep.subr.bf16.mxu1 %v4930_v10  ;;  %3573 = vmatprep.subr.bf16.mxu0 %v4933_v11  ;;  %v4986_v10 = vld [vmem:[%s6631_s8 + $0x1d0] ss:$28 sps:$4 sm:$0xff]   ;;  %v4989_v11 = vld [vmem:[%s6631_s8 + $0x398] ss:$28 sps:$4 sm:$0xff]  }
 0x3ad   :  { %v2283_v19 = vpop.f32.mrb[8].mxu1 }
 0x3ae   :  { %v2285_v20 = vpop.f32.mrb[9].mxu1  ;;  %v2284_v25 = vadd.f32 %v2283_v19, %v2039_v15  ;;  %v4996_v15 = vld [vmem:[%s6631_s8 + $0x244] ss:$28 sps:$4 sm:$0xff]   ;;  %v5000_v19 = vld [vmem:[%s6631_s8 + $0x27c] ss:$28 sps:$4 sm:$0xff]  }
 0x3af   :  { %v2286_v21 = vadd.f32 %v2285_v20, %v2043_v12  ;;  %v2287_v22 = vpop.f32.mrb[10].mxu1  ;;  %3492 = vmatpush1.bf16.msra.mxu1 %v4928_v13  ;;  %3574 = vmatpush1.bf16.msra.mxu0 %v4931_v14  ;;  %v4992_v12 = vld [vmem:[%s6631_s8 + $0x20c] ss:$28 sps:$4 sm:$0xff]   ;;  %v4998_v20 = vld [vmem:[%s6631_s8 + $0x278] ss:$28 sps:$4 sm:$0xff]  }
 0x3b0   :  { %v2288_v26 = vpop.f32.mrb[11].mxu1  ;;  %3493 = vmatprep.subr.bf16.mxu1 %v4936_v16  ;;  %3575 = vmatprep.subr.bf16.mxu0 %v4939_v18  ;;  %v2292_v34 = vmax.f32 %v2284_v25, 0.0  ;;  %v4990_v13 = vld [vmem:[%s6631_s8 + $0x208] ss:$28 sps:$4 sm:$0xff]   ;;  %v4993_v14 = vld [vmem:[%s6631_s8 + $0x3d0] ss:$28 sps:$4 sm:$0xff]  }
 0x3b1   :  { %v2293_v29 = vmax.f32 %v2286_v21, 0.0  ;;  %v4994_v16 = vld [vmem:[%s6631_s8 + $0x240] ss:$28 sps:$4 sm:$0xff]   ;;  %v4997_v18 = vld [vmem:[%s6631_s8 + $0x408] ss:$28 sps:$4 sm:$0xff]  }
 0x3b2   :  { %v6356_v38 = vpack.c.bf16 %v2292_v34, %v2292_v34  ;;  %v5001_v21 = vld [vmem:[%s6631_s8 + $0x440] ss:$28 sps:$4 sm:$0xff]   ;;  %v5004_v22 = vld [vmem:[%s6631_s8 + $0x2b4] ss:$28 sps:$4 sm:$0xff]   ;;  %v5008_v25 = vld [vmem:[%s6631_s8 + $0x2ec] ss:$28 sps:$4 sm:$0xff]  }
 0x3b3   :  { %v6335_v31 = vpack.c.bf16 %v2293_v29, %v2293_v29  ;;  %3494 = vmatpush1.bf16.msra.mxu1 %v4934_v23  ;;  %3576 = vmatpush1.bf16.msra.mxu0 %v4937_v24  ;;  %v5002_v23 = vld [vmem:[%s6631_s8 + $0x2b0] ss:$28 sps:$4 sm:$0xff]   ;;  %v5005_v24 = vld [vmem:[%s6631_s8 + $0x478] ss:$28 sps:$4 sm:$0xff]   ;;  %v5006_v26 = vld [vmem:[%s6631_s8 + $0x2e8] ss:$28 sps:$4 sm:$0xff]  }
 0x3b4   :  { %3495 = vmatprep.subr.bf16.mxu1 %v4942_v27  ;;  %3577 = vmatprep.subr.bf16.mxu0 %v4945_v28  ;;  %v5009_v27 = vld [vmem:[%s6631_s8 + $0x4b0] ss:$28 sps:$4 sm:$0xff]   ;;  %v5012_v28 = vld [vmem:[%s6631_s8 + $0x324] ss:$28 sps:$4 sm:$0xff]   ;;  %v5014_v34 = vld [vmem:[%s6631_s8 + $0x358] ss:$28 sps:$4 sm:$0xff]  }
 0x3b5   :  { %4292 = vmatprep.mubr.msk.bf16.mxu1 %vm1250_vm0, %v6335_v31  ;;  %4293 = vmatprep.mubr.msk.bf16.mxu0 %vm1250_vm0, %v6335_v31  ;;  %v5010_v29 = vld [vmem:[%s6631_s8 + $0x320] ss:$28 sps:$4 sm:$0xff]  }
 0x3b7   :  { %3496 = vmatpush1.bf16.msra.mxu1 %v4940_v32  ;;  %3578 = vmatpush1.bf16.msra.mxu0 %v4943_v33  ;;  %v5013_v32 = vld [vmem:[%s6631_s8 + $0x4e8] ss:$28 sps:$4 sm:$0xff]   ;;  %v5016_v33 = vld [vmem:[%s6631_s8 + $0x35c] ss:$28 sps:$4 sm:$0xff]  }
 0x3b8   :  { %3602 = vmatprep.subr.bf16.mxu1 %v4948_v35  ;;  %4304 = vmatprep.subr.bf16.mxu0 %v4949_v36  ;;  %v5017_v35 = vld [vmem:[%s6631_s8 + $0x520] ss:$28 sps:$4 sm:$0xff]   ;;  %v5020_v36 = vld [vmem:[%s6631_s8 + $0x394] ss:$28 sps:$4 sm:$0xff]  }
 0x3ba   :  { %3512 = vmatmul.mubr.bf16.vlgmr.msra.gmra.mrb[12].mxu1 %v6356_v38  ;;  %3594 = vmatmul.mubr.bf16.vlgmr.msra.gmra.mrb[8].mxu0 %v6356_v38 }
 0x3bb   :  { %3603 = vmatpush1.bf16.msra.mxu1 %v4946_v37  ;;  %3634 = vmatprep.mubr.bf16.mxu1 %v6227_v46  ;;  %v5018_v37 = vld [vmem:[%s6631_s8 + $0x390] ss:$28 sps:$4 sm:$0xff]  }
 0x3bc   :  { %4305 = vmatpush3.bf16.msra.mxu0 %v4950_v39  ;;  %3716 = vmatprep.mubr.bf16.mxu0 %v6227_v46  ;;  %v4960_v46 = vld [vmem:[%s6631_s8 + $0x88] ss:$28 sps:$4 sm:$0xff]   ;;  %v5021_v39 = vld [vmem:[%s6631_s8 + $0x558] ss:$28 sps:$4 sm:$0xff]  }
 0x3bd   :  { %3604 = vmatprep.subr.bf16.mxu1 %v4953_v40  ;;  %4306 = vmatprep.subr.bf16.mxu0 %v4954_v41  ;;  %v5024_v40 = vld [vmem:[%s6631_s8 + $0x3cc] ss:$28 sps:$4 sm:$0xff]  }
 0x3be   :  { %v5022_v41 = vld [vmem:[%s6631_s8 + $0x3c8] ss:$28 sps:$4 sm:$0xff]  }
 0x3bf   :  { %3605 = vmatpush1.bf16.msra.mxu1 %v4951_v42  ;;  %v5027_v42 = vld [vmem:[%s6631_s8 + $0x404] ss:$28 sps:$4 sm:$0xff]  }
 0x3c0   :  { %4307 = vmatpush3.bf16.msra.mxu0 %v4955_v43  ;;  %3606 = vmatprep.subr.bf16.mxu1 %v4958_v44  ;;  %v5033_v43 = vld [vmem:[%s6631_s8 + $0x474] ss:$28 sps:$4 sm:$0xff]  }
 0x3c1   :  { %4308 = vmatprep.subr.bf16.mxu0 %v4959_v45  ;;  %v5031_v44 = vld [vmem:[%s6631_s8 + $0x470] ss:$28 sps:$4 sm:$0xff]  }
 0x3c2   :  { %v5036_v45 = vld [vmem:[%s6631_s8 + $0x4ac] ss:$28 sps:$4 sm:$0xff]  }
 0x3c3   :  { %3607 = vmatpush1.bf16.msra.mxu1 %v4956_v47  ;;  %v5034_v47 = vld [vmem:[%s6631_s8 + $0x4a8] ss:$28 sps:$4 sm:$0xff]  }
 0x3c4   :  { %4309 = vmatpush3.bf16.msra.mxu0 %v4960_v46  ;;  %3608 = vmatprep.subr.bf16.mxu1 %v4963_v48  ;;  %v5039_v46 = vld [vmem:[%s6631_s8 + $0x4e4] ss:$28 sps:$4 sm:$0xff]  }
 0x3c5   :  { %4310 = vmatprep.subr.bf16.mxu0 %v4964_v50  ;;  %v5037_v48 = vld [vmem:[%s6631_s8 + $0x4e0] ss:$28 sps:$4 sm:$0xff]  }
 0x3c6   :  { %v5042_v50 = vld [vmem:[%s6631_s8 + $0x51c] ss:$28 sps:$4 sm:$0xff]  }
 0x3c7   :  { %3609 = vmatpush1.bf16.msra.mxu1 %v4961_v51  ;;  %v5040_v51 = vld [vmem:[%s6631_s8 + $0x518] ss:$28 sps:$4 sm:$0xff]  }
 0x3c8   :  { %4311 = vmatpush3.bf16.msra.mxu0 %v4965_v52  ;;  %3610 = vmatprep.subr.bf16.mxu1 %v4968_v53  ;;  %v5045_v52 = vld [vmem:[%s6631_s8 + $0x554] ss:$28 sps:$4 sm:$0xff]  }
 0x3c9   :  { %4312 = vmatprep.subr.bf16.mxu0 %v4969_v54  ;;  %v5043_v53 = vld [vmem:[%s6631_s8 + $0x550] ss:$28 sps:$4 sm:$0xff]   ;;  %v6598_v54 = vld [vmem:[%s6636_s9] sm:$0x7f] }
 0x3cb   :  { %3611 = vmatpush1.bf16.msra.mxu1 %v4966_v55  ;;  %v2503_v55 = vrot.slane %v6598_v54, %v5851_v58 }
 0x3cc   :  { %4313 = vmatpush3.bf16.msra.mxu0 %v4970_v56  ;;  %3612 = vmatprep.subr.bf16.mxu1 %v4973_v59  ;;  %v2511_v56 = vrot.slane %v6598_v54, %v5900_v30  ;;  %v2507_v59 = vrot.slane %v6598_v54, %v5857_v60 }
 0x3cd   :  { %4314 = vmatprep.subr.bf16.mxu0 %v4974_v62  ;;  %v2515_v62 = vrot.slane %v6598_v54, %v5860_v61 }
 0x3cf   :  { %3613 = vmatpush1.bf16.msra.mxu1 %v4971_v63 }
 0x3d0   :  { %4315 = vmatpush3.bf16.msra.mxu0 %v4975_v0  ;;  %3614 = vmatprep.subr.bf16.mxu1 %v4978_v1 }
 0x3d1   :  { %4316 = vmatprep.subr.bf16.mxu0 %v4979_v2 }
 0x3d3   :  { %3615 = vmatpush1.bf16.msra.mxu1 %v4976_v3 }
 0x3d4   :  { %4317 = vmatpush3.bf16.msra.mxu0 %v4980_v4  ;;  %3616 = vmatprep.subr.bf16.mxu1 %v4983_v5 }
 0x3d5   :  { %4318 = vmatprep.subr.bf16.mxu0 %v4984_v6 }
 0x3d7   :  { %3617 = vmatpush1.bf16.msra.mxu1 %v4981_v7 }
 0x3d8   :  { %4319 = vmatpush3.bf16.msra.mxu0 %v4985_v8  ;;  %3618 = vmatprep.subr.bf16.mxu1 %v4988_v9 }
 0x3d9   :  { %3724 = vmatprep.subr.bf16.mxu0 %v5062_v17 }
 0x3db   :  { %3717 = vmatmul.mubr.bf16.vlgmr.msra.gmra.mrb[12].mxu0 %v6235_v49  ;;  %3619 = vmatpush1.bf16.msra.mxu1 %v4986_v10 }
 0x3dc   :  { %3725 = vmatpush1.bf16.msra.mxu0 %v4989_v11  ;;  %4295 = vmatprep.mubr.msk.bf16.mxu0 %vm1250_vm0, %v6335_v31 }
 0x3dd   :  { %3620 = vmatprep.subr.bf16.mxu1 %v4992_v12  ;;  %3726 = vmatprep.subr.bf16.mxu0 %v5062_v17 }
 0x3df   :  { %3621 = vmatpush1.bf16.msra.mxu1 %v4990_v13 }
 0x3e0   :  { %3727 = vmatpush1.bf16.msra.mxu0 %v4993_v14  ;;  %3622 = vmatprep.subr.bf16.mxu1 %v4996_v15 }
 0x3e1   :  { %3728 = vmatprep.subr.bf16.mxu0 %v5062_v17 }
 0x3e3   :  { %3623 = vmatpush1.bf16.msra.mxu1 %v4994_v16 }
 0x3e4   :  { %3729 = vmatpush1.bf16.msra.mxu0 %v4997_v18  ;;  %3624 = vmatprep.subr.bf16.mxu1 %v5000_v19 }
 0x3e5   :  { %3730 = vmatprep.subr.bf16.mxu0 %v5062_v17 }
 0x3e7   :  { %3625 = vmatpush1.bf16.msra.mxu1 %v4998_v20 }
 0x3e8   :  { %3731 = vmatpush1.bf16.msra.mxu0 %v5001_v21  ;;  %3626 = vmatprep.subr.bf16.mxu1 %v5004_v22 }
 0x3e9   :  { %3732 = vmatprep.subr.bf16.mxu0 %v5062_v17 }
 0x3eb   :  { %3627 = vmatpush1.bf16.msra.mxu1 %v5002_v23 }
 0x3ec   :  { %3733 = vmatpush1.bf16.msra.mxu0 %v5005_v24  ;;  %3628 = vmatprep.subr.bf16.mxu1 %v5008_v25 }
 0x3ed   :  { %3734 = vmatprep.subr.bf16.mxu0 %v5062_v17 }
 0x3ef   :  { %3629 = vmatpush1.bf16.msra.mxu1 %v5006_v26 }
 0x3f0   :  { %3735 = vmatpush1.bf16.msra.mxu0 %v5009_v27  ;;  %3630 = vmatprep.subr.bf16.mxu1 %v5012_v28 }
 0x3f1   :  { %3736 = vmatprep.subr.bf16.mxu0 %v5062_v17 }
 0x3f3   :  { %3631 = vmatpush1.bf16.msra.mxu1 %v5010_v29 }
 0x3f4   :  { %3737 = vmatpush1.bf16.msra.mxu0 %v5013_v32  ;;  %3632 = vmatprep.subr.bf16.mxu1 %v5016_v33  ;;  %v2526_v32 = vsub.s32 6, %v5848_v57 }
 0x3f5   :  { %3738 = vmatprep.subr.bf16.mxu0 %v5062_v17 }
 0x3f6   :  { %v2527_v33 = vrot.slane %v6598_v54, %v2526_v32 }
 0x3f7   :  { %3633 = vmatpush1.bf16.msra.mxu1 %v5014_v34 }
 0x3f8   :  { %3739 = vmatpush1.bf16.msra.mxu0 %v5017_v35  ;;  %3643 = vmatprep.subr.bf16.mxu1 %v5020_v36 }
 0x3f9   :  { %3740 = vmatprep.subr.bf16.mxu0 %v5062_v17  ;;  %v5025_v17 = vld [vmem:[%s6631_s8 + $0x400] ss:$28 sps:$4 sm:$0xff]  }
 0x3fa   :  { %3635 = vmatmul.mubr.bf16.vlgmr.msra.gmra.mrb[16].mxu1 %v6235_v49  ;;  %v5030_v49 = vld [vmem:[%s6631_s8 + $0x43c] ss:$28 sps:$4 sm:$0xff]  }
 0x3fb   :  { %3644 = vmatpush1.bf16.msra.mxu1 %v5018_v37  ;;  %4294 = vmatprep.mubr.msk.bf16.mxu1 %vm1250_vm0, %v6335_v31  ;;  %v5028_v31 = vld [vmem:[%s6631_s8 + $0x438] ss:$28 sps:$4 sm:$0xff]  }
 0x3fc   :  { %3741 = vmatpush1.bf16.msra.mxu0 %v5021_v39  ;;  %3645 = vmatprep.subr.bf16.mxu1 %v5024_v40 }
 0x3ff   :  { %3757 = vmatmul.mubr.bf16.vlgmr.msra.gmra.mrb[16].mxu0 %v6356_v38  ;;  %3646 = vmatpush1.bf16.msra.mxu1 %v5022_v41 }
 0x400   :  { %3647 = vmatprep.subr.bf16.mxu1 %v5027_v42 }
 0x403   :  { %3648 = vmatpush1.bf16.msra.mxu1 %v5025_v17 }
 0x404   :  { %3649 = vmatprep.subr.bf16.mxu1 %v5030_v49 }
 0x407   :  { %3650 = vmatpush1.bf16.msra.mxu1 %v5028_v31 }
 0x408   :  { %3651 = vmatprep.subr.bf16.mxu1 %v5033_v43  ;;  %v2518_v43 = vsub.s32 4, %v5848_v57 }
 0x40b   :  { %3652 = vmatpush1.bf16.msra.mxu1 %v5031_v44  ;;  %v2522_v44 = vsub.s32 5, %v5848_v57 }
 0x40c   :  { %3653 = vmatprep.subr.bf16.mxu1 %v5036_v45  ;;  %v2519_v45 = vrot.slane %v6598_v54, %v2518_v43 }
 0x40f   :  { %3654 = vmatpush1.bf16.msra.mxu1 %v5034_v47  ;;  %v2523_v47 = vrot.slane %v6598_v54, %v2522_v44 }
 0x410   :  { %3655 = vmatprep.subr.bf16.mxu1 %v5039_v46 }
 0x413   :  { %3656 = vmatpush1.bf16.msra.mxu1 %v5037_v48 }
 0x414   :  { %3657 = vmatprep.subr.bf16.mxu1 %v5042_v50 }
 0x417   :  { %3658 = vmatpush1.bf16.msra.mxu1 %v5040_v51 }
 0x418   :  { %3659 = vmatprep.subr.bf16.mxu1 %v5045_v52 }
 0x41b   :  { %3660 = vmatpush1.bf16.msra.mxu1 %v5043_v53 }
 0x41e   :  { %3676 = vmatmul.mubr.bf16.vlgmr.msra.gmra.mrb[16].mxu1 %v6356_v38 }
 0x48d   :  { %v3513_v63 = vpop.f32.mrb[12].mxu1  ;;  %v3595_v0 = vpop.f32.mrb[8].mxu0 }
 0x48e   :  { %v4332_v38 = vadd.f32 %v3513_v63, %v2503_v55  ;;  %v4334_v1 = vadd.f32 %v3595_v0, %v2511_v56  ;;  %v3515_v2 = vpop.f32.mrb[13].mxu1  ;;  %v3597_v3 = vpop.f32.mrb[9].mxu0 }
 0x48f   :  { %v4333_v4 = vadd.f32 %v3515_v2, %v2507_v59  ;;  %v4335_v5 = vadd.f32 %v3597_v3, %v2515_v62  ;;  %v3517_v6 = vpop.f32.mrb[14].mxu1  ;;  %v3599_v7 = vpop.f32.mrb[10].mxu0 }
 0x490   :  { %v3764_v58 = vmul.f32 0.5, %v4332_v38  ;;  %v3766_v8 = vmul.f32 0.5, %v4334_v1  ;;  %v3518_v9 = vpop.f32.mrb[15].mxu1  ;;  %v3600_v30 = vpop.f32.mrb[11].mxu0 }
 0x491   :  { %v3765_v10 = vmul.f32 0.5, %v4333_v4  ;;  %v3767_v11 = vmul.f32 0.5, %v4335_v5 }
 0x492   :  { %5048 = vtanh.f32 %v3764_v58 }
 0x493   :  { %5050 = vtanh.f32 %v3766_v8 }
 0x494   :  { %5052 = vtanh.f32 %v3765_v10 }
 0x495   :  { %5054 = vtanh.f32 %v3767_v11 }
 0x49c   :  { %v5049_v60 = vpop.eup %5048 }
 0x49d   :  { %v5051_v61 = vpop.eup %5050  ;;  %v3778_v12 = vmul.f32 0.5, %v5049_v60 }
 0x49e   :  { %v5053_v13 = vpop.eup %5052  ;;  %v3780_v14 = vmul.f32 0.5, %v5051_v61 }
 0x49f   :  { %v5055_v15 = vpop.eup %5054  ;;  %v3785_v16 = vadd.f32 0.5, %v3778_v12  ;;  %v3779_v18 = vmul.f32 0.5, %v5053_v13 }
 0x4a0   :  { %v3787_v19 = vadd.f32 0.5, %v3780_v14  ;;  %v3781_v20 = vmul.f32 0.5, %v5055_v15 }
 0x4a1   :  { %v3786_v21 = vadd.f32 0.5, %v3779_v18 }
 0x4a2   :  { %v3788_v22 = vadd.f32 0.5, %v3781_v20 }
 0x4a3   :  { %v4300_v23 = vpack.c.bf16 %v3786_v21, %v3785_v16 }
 0x4a4   :  { %v4301_v24 = vpack.c.bf16 %v3788_v22, %v3787_v19 }
 0x4a5   :  { %3821 = vst [vmem:[%s6637_s10] sm:$0xff] %v4300_v23 }
 0x4a6   :  { %3822 = vst [vmem:[%s6637_s10 + $0x8] sm:$0xff] %v4301_v24 }
 0x4ae   :  { %v4320_v25 = vpop.f32.mrb[12].mxu0 }
 0x4af   :  { %v4321_v26 = vpop.f32.mrb[13].mxu0 }
 0x4b0   :  { %v4322_v27 = vadd.f32 %v4321_v26, %v4320_v25  ;;  %v4323_v28 = vpop.f32.mrb[14].mxu0 }
 0x4b1   :  { %v4324_v29 = vpop.f32.mrb[15].mxu0 }
 0x4b2   :  { %v3719_v34 = vadd.f32 %v4322_v27, %v2527_v33 }
 0x4d2   :  { %v3758_v35 = vpop.f32.mrb[16].mxu0 }
 0x4d3   :  { %v3759_v36 = vadd.f32 %v3758_v35, %v3719_v34  ;;  %v3760_v37 = vpop.f32.mrb[17].mxu0 }
 0x4d4   :  { %v3761_v39 = vpop.f32.mrb[18].mxu0 }
 0x4d5   :  { %v3770_v40 = vmul.f32 0.5, %v3759_v36  ;;  %v3762_v41 = vpop.f32.mrb[19].mxu0 }
 0x4d7   :  { %5056 = vtanh.f32 %v3770_v40 }
 0x4e1   :  { %v5057_v42 = vpop.eup %5056 }
 0x4e2   :  { %v3784_v17 = vmul.f32 0.5, %v5057_v42 }
 0x4e4   :  { %v3791_v49 = vadd.f32 0.5, %v3784_v17 }
 0x4e6   :  { %v4303_v31 = vpack.c.bf16 %v3791_v49, %v3791_v49 }
 0x4e8   :  { %3825 = vst.msk [vmem:[%s6637_s10 + $0x18] sm:$0xf] %vm3824_vm1, %v4303_v31 }
 0x4f1   :  { %v3677_v46 = vpop.f32.mrb[16].mxu1 }
 0x4f2   :  { %v4336_v48 = vadd.f32 %v3677_v46, %v2519_v45  ;;  %v3679_v50 = vpop.f32.mrb[17].mxu1 }
 0x4f3   :  { %v4337_v51 = vadd.f32 %v3679_v50, %v2523_v47  ;;  %v3681_v52 = vpop.f32.mrb[18].mxu1 }
 0x4f4   :  { %v3768_v53 = vmul.f32 0.5, %v4336_v48  ;;  %v3682_v55 = vpop.f32.mrb[19].mxu1 }
 0x4f5   :  { %v3769_v56 = vmul.f32 0.5, %v4337_v51 }
 0x4f6   :  { %5058 = vtanh.f32 %v3768_v53 }
 0x4f7   :  { %5060 = vtanh.f32 %v3769_v56 }
 0x500   :  { %v5059_v59 = vpop.eup %5058 }
 0x501   :  { %v5061_v62 = vpop.eup %5060  ;;  %v3782_v63 = vmul.f32 0.5, %v5059_v59 }
 0x502   :  { %v3783_v0 = vmul.f32 0.5, %v5061_v62 }
 0x503   :  { %v3789_v38 = vadd.f32 0.5, %v3782_v63 }
 0x504   :  { %v3790_v57 = vadd.f32 0.5, %v3783_v0 }
 0x506   :  { %v4302_v1 = vpack.c.bf16 %v3790_v57, %v3789_v38 }
 0x508   :  { %3823 = vst [vmem:[%s6637_s10 + $0x10] sm:$0xff] %v4302_v1 }

</bundles_post_ra>
